<compile_context>
chip_gen: v7x
topology: tpu7x:2x2x1
jax: 0.10.0
libtpu: 0.0.40
codegen_flags: <defaults>
</compile_context>

<pallas_src>
import functools

import jax
import jax.numpy as jnp
import numpy as np
from jax.experimental import pallas as pl
from jax.experimental.pallas import tpu as pltpu


def _gaussian_1d(window_size: int, sigma: float) -> np.ndarray:
    # Matches torch `gaussian(window_size, 1.5)` (then normalized).
    xs = np.arange(window_size, dtype=np.float64)
    g = np.exp(-((xs - window_size // 2) ** 2) / (2.0 * sigma ** 2))
    g = g / g.sum()
    return g.astype(np.float32)


def _band_matrix(n: int, gauss: np.ndarray, pad: int) -> np.ndarray:
    """Banded matrix B with B[k, j] = g[k - j + pad] for |k - j| <= pad else 0.

    X @ B applies the zero-padded 1-D Gaussian along the last axis;
    B @ X applies it along the second-to-last axis (g is symmetric).
    """
    idx = np.arange(n)
    d = idx[:, None] - idx[None, :]
    vals = gauss[np.clip(d + pad, 0, len(gauss) - 1)]
    return np.where(np.abs(d) <= pad, vals, 0.0).astype(np.float32)


def _split_bf16(x):
    """hi/lo bf16 split of an f32 array (for ~f32-accurate bf16 matmuls)."""
    x = jnp.asarray(x, jnp.float32)
    hi = x.astype(jnp.bfloat16)
    lo = (x - hi.astype(jnp.float32)).astype(jnp.bfloat16)
    return hi, lo


def _dot3(a_hi, a_lo, b_hi, b_lo):
    """A @ B from bf16 splits: 3 single-pass MXU matmuls, f32 accumulation."""
    acc = jnp.dot(a_hi, b_hi, preferred_element_type=jnp.float32)
    acc = acc + jnp.dot(a_lo, b_hi, preferred_element_type=jnp.float32)
    acc = acc + jnp.dot(a_hi, b_lo, preferred_element_type=jnp.float32)
    return acc


def _choose_group(bc: int, hp: int, w: int, itemsize: int) -> int:
    """Images per grid step: must divide bc; bounded by MXU fill / VMEM / waste caps."""
    g_rows = max(1, 512 // hp)                       # keep kron(eye(G), ch) <= (512, 512)
    per_img = hp * w * (2 * 2 * itemsize + 24 * 4)   # dbl-buffered inputs + f32 temps
    g_vmem = max(1, (20 * 1024 * 1024) // per_img)
    g_max = int(min(bc, g_rows, g_vmem))
    if bc >= 2:
        g_max = min(g_max, bc // 2)                  # keep >= 2 parallel steps (v7x: 2 TCs)
    g_max = max(g_max, 1)
    for g in range(g_max, 0, -1):
        if bc % g == 0:
            return g
    return 1


def _vmem_limit_bytes() -> int:
    """Generation-aware scoped-VMEM limit (v5e/v6e: 128 MiB phys, v7x: 64 MiB)."""
    try:
        cap = getattr(pltpu.get_tpu_info(), "vmem_capacity_bytes", None)
    except Exception:
        cap = None
    if not cap:
        return 48 * 1024 * 1024
    return int(min(100 * 1024 * 1024, (cap * 3) // 4))


def _ssim_kernel(x1_ref, x2_ref, cwh_ref, cwl_ref, chh_ref, chl_ref, pool_ref,
                 out_ref, maps_ref, *, G, Hp, W):
    """One group of G channel-images per grid step -> per-image SSIM spatial sums."""
    GH = G * Hp

    x1 = x1_ref[...].reshape(GH, W).astype(jnp.float32)   # free sublane collapse
    x2 = x2_ref[...].reshape(GH, W).astype(jnp.float32)

    # The 5 maps to blur, written straight into VMEM scratch (sublane-aligned
    # chunks; avoids a jnp.concatenate copy).
    maps_ref[0 * GH:1 * GH] = x1
    maps_ref[1 * GH:2 * GH] = x2
    maps_ref[2 * GH:3 * GH] = x1 * x1
    maps_ref[3 * GH:4 * GH] = x2 * x2
    maps_ref[4 * GH:5 * GH] = x1 * x2

    # Separable zero-padded Gaussian blur, bf16 operands + f32 accumulation.
    # W pass: one big-M matmul over all 5 maps and G images (M = 5*G*Hp).
    m_hi, m_lo = _split_bf16(maps_ref[...])
    rowc = _dot3(m_hi, m_lo, cwh_ref[...], cwl_ref[...])            # (5*GH, W)

    # H pass: one (GH,GH)x(GH,W) matmul per map; resident constant is
    # kron(eye(G), ch) == plain ch (no waste) for large images where G == 1.
    chh = chh_ref[...]
    chl = chl_ref[...]
    conv = []
    for m in range(5):
        r_hi, r_lo = _split_bf16(rowc[m * GH:(m + 1) * GH])
        conv.append(_dot3(chh, chl, r_hi, r_lo))                    # (GH, W)
    mu1, mu2, e11, e22, e12 = conv

    mu1_sq = mu1 * mu1
    mu2_sq = mu2 * mu2
    mu1_mu2 = mu1 * mu2
    sigma1_sq = e11 - mu1_sq
    sigma2_sq = e22 - mu2_sq
    sigma12 = e12 - mu1_mu2

    C1 = 0.01 ** 2
    C2 = 0.03 ** 2
    num = (2.0 * mu1_mu2 + C1) * (2.0 * sigma12 + C2)
    den = (mu1_sq + mu2_sq + C1) * (sigma1_sq + sigma2_sq + C2)

    inv = pl.reciprocal(den, approx=True)      # EUP slot (otherwise idle)
    inv = inv * (2.0 - den * inv)              # one Newton step -> f32 accuracy
    ssim_map = num * inv                       # (GH, W)

    # Per-image spatial sums: the 0/1 pooling matrix (exact in bf16) folds the
    # per-image sublane-block reduction AND masks H-alignment padding rows.
    s_hi, s_lo = _split_bf16(ssim_map)
    pool = pool_ref[...]
    blocks = (jnp.dot(pool, s_hi, preferred_element_type=jnp.float32)
              + jnp.dot(pool, s_lo, preferred_element_type=jnp.float32))  # (G, W)
    per_img = jnp.sum(blocks, axis=1, keepdims=True)                      # (G, 1)

    # Lane-dense unmasked store.
    out_ref[0] = jnp.broadcast_to(per_img, (G, 128))


def ssim_pallas(img1, img2, *, window_size=11, size_average=False):
    """Equivalent of SSIM(window_size=11, size_average=...).forward(img1, img2)."""
    B, C, H, W = img1.shape
    BC = B * C
    pad = window_size // 2
    g1d = _gaussian_1d(window_size, 1.5)

    Hp = ((H + 7) // 8) * 8                     # sublane-tile aligned row count
    itemsize = jnp.dtype(img1.dtype).itemsize
    G = _choose_group(BC, Hp, W, itemsize)      # images per grid step (G | BC)
    GH = G * Hp
    n_steps = BC // G

    cw = _band_matrix(W, g1d, pad)                       # (W, W)   lane-axis conv
    ch = _band_matrix(Hp, g1d, pad)                      # (Hp, Hp) sublane-axis conv
    chg = np.kron(np.eye(G, dtype=np.float32), ch)       # (GH, GH); == ch when G == 1
    pool = np.zeros((G, GH), dtype=np.float32)           # per-image pooling + pad-row mask
    for g in range(G):
        pool[g, g * Hp:g * Hp + H] = 1.0

    cw_hi, cw_lo = _split_bf16(cw)                       # constants pre-split to bf16
    ch_hi, ch_lo = _split_bf16(chg)
    pool_b = jnp.asarray(pool, jnp.bfloat16)             # 0/1 -> exact in bf16

    # Inputs stay in their native dtype (no wrapper f32 cast / extra HBM copy).
    x1 = img1.reshape(BC, H, W)
    x2 = img2.reshape(BC, H, W)
    if Hp != H:
        x1 = jnp.pad(x1, ((0, 0), (0, Hp - H), (0, 0)))
        x2 = jnp.pad(x2, ((0, 0), (0, Hp - H), (0, 0)))

    flops = int(n_steps * (3 * 2 * 5 * GH * W * W        # W pass (3 bf16 passes)
                           + 5 * 3 * 2 * GH * GH * W     # H pass (3 bf16 passes x 5 maps)
                           + 2 * 2 * G * GH * W          # pooling
                           + 50 * GH * W))               # elementwise + splits
    bytes_accessed = int(2 * BC * Hp * W * itemsize
                         + 2 * (2 * W * W + 2 * GH * GH + G * GH)
                         + 4 * n_steps * G * 128)

    # TODO(synk): for very large images add an H row-block grid axis (halo
    #             blocks) and band-block the W-pass matmul; needed earliest on
    #             v7x's 64 MiB VMEM.
    # TODO(synk): for W < 128, lane-pack k = 128 // W images with a k-block-
    #             diagonal cw to fill the vreg / MXU N dimension.
    kernel = functools.partial(_ssim_kernel, G=G, Hp=Hp, W=W)
    out = pl.pallas_call(
        kernel,
        out_shape=jax.ShapeDtypeStruct((n_steps, G, 128), jnp.float32),
        grid=(n_steps,),
        in_specs=[
            pl.BlockSpec((G, Hp, W), lambda i: (i, 0, 0)),
            pl.BlockSpec((G, Hp, W), lambda i: (i, 0, 0)),
            pl.BlockSpec((W, W), lambda i: (0, 0)),       # resident constants
            pl.BlockSpec((W, W), lambda i: (0, 0)),
            pl.BlockSpec((GH, GH), lambda i: (0, 0)),
            pl.BlockSpec((GH, GH), lambda i: (0, 0)),
            pl.BlockSpec((G, GH), lambda i: (0, 0)),
        ],
        out_specs=pl.BlockSpec((1, G, 128), lambda i: (i, 0, 0)),
        scratch_shapes=[pltpu.VMEM((5 * GH, W), jnp.float32)],
        compiler_params=pltpu.CompilerParams(
            dimension_semantics=("parallel",),
            vmem_limit_bytes=_vmem_limit_bytes(),
        ),
        cost_estimate=pl.CostEstimate(
            flops=flops,
            transcendentals=int(BC * Hp * W),
            bytes_accessed=bytes_accessed,
        ),
    )(x1, x2, cw_hi, cw_lo, ch_hi, ch_lo, pool_b)

    per_bc_sum = out[:, :, 0].reshape(B, C)   # per-(batch, channel) spatial sums
    if size_average:
        return jnp.sum(per_bc_sum) / (B * C * H * W)
    # ssim_map.mean(1).mean(1).mean(1) == mean over (C, H, W) per batch element
    return jnp.sum(per_bc_sum, axis=1) / (C * H * W)


def _ssim_reference(img1, img2, *, window_size=11, size_average=False):
    """Pure-JAX reference (lax depthwise conv) mirroring the PyTorch code."""
    B, C, H, W = img1.shape
    pad = window_size // 2
    g = jnp.asarray(_gaussian_1d(window_size, 1.5))
    win2d = jnp.outer(g, g)
    w = jnp.broadcast_to(win2d[None, None], (C, 1, window_size, window_size))

    def conv(x):
        return jax.lax.conv_general_dilated(
            x, w, window_strides=(1, 1), padding=[(pad, pad), (pad, pad)],
            dimension_numbers=("NCHW", "OIHW", "NCHW"), feature_group_count=C,
            precision=jax.lax.Precision.HIGHEST,
        )

    mu1, mu2 = conv(img1), conv(img2)
    mu1_sq, mu2_sq, mu1_mu2 = mu1 * mu1, mu2 * mu2, mu1 * mu2
    sigma1_sq = conv(img1 * img1) - mu1_sq
    sigma2_sq = conv(img2 * img2) - mu2_sq
    sigma12 = conv(img1 * img2) - mu1_mu2
    C1, C2 = 0.01 ** 2, 0.03 ** 2
    ssim_map = ((2 * mu1_mu2 + C1) * (2 * sigma12 + C2)) / (
        (mu1_sq + mu2_sq + C1) * (sigma1_sq + sigma2_sq + C2)
    )
    if size_average:
        return ssim_map.mean()
    return ssim_map.mean(axis=(1, 2, 3))


if __name__ == "__main__":
    key = jax.random.PRNGKey(0)
    k1, k2 = jax.random.split(key)
    B, C, H, W = 2, 4, 16, 16
    img1 = jax.random.uniform(k1, (B, C, H, W), dtype=jnp.float32)
    img2 = jax.random.uniform(k2, (B, C, H, W), dtype=jnp.float32)

    out = ssim_pallas(img1, img2, window_size=11, size_average=False)
    out = jax.block_until_ready(out)
    ref = _ssim_reference(img1, img2, window_size=11, size_average=False)
    assert out.shape == (B,)
    assert np.allclose(np.asarray(out), np.asarray(ref), rtol=1e-3, atol=1e-3)

    out_avg = ssim_pallas(img1, img2, window_size=11, size_average=True)
    out_avg = jax.block_until_ready(out_avg)
    ref_avg = _ssim_reference(img1, img2, window_size=11, size_average=True)
    assert np.allclose(np.asarray(out_avg), np.asarray(ref_avg), rtol=1e-3, atol=1e-3)

    print("KERNEL_OK")
</pallas_src>

<mosaic_0001>
module attributes {stable_mosaic.version = 11 : i64} {
  func.func @_ssim_kernel(%arg0: i32, %arg1: memref<4x16x16xf32, #tpu.memory_space<vmem>>, %arg2: memref<4x16x16xf32, #tpu.memory_space<vmem>>, %arg3: memref<16x16xbf16, #tpu.memory_space<vmem>>, %arg4: memref<16x16xbf16, #tpu.memory_space<vmem>>, %arg5: memref<64x64xbf16, #tpu.memory_space<vmem>>, %arg6: memref<64x64xbf16, #tpu.memory_space<vmem>>, %arg7: memref<4x64xbf16, #tpu.memory_space<vmem>>, %arg8: memref<1x4x128xf32, #tpu.memory_space<vmem>>, %arg9: memref<320x16xf32, #tpu.memory_space<vmem>>) attributes {dimension_semantics = [#tpu.dimension_semantics<parallel>], iteration_bounds = array<i64: 2>, scalar_prefetch = 0 : i64, scratch_operands = 1 : i64, tpu.core_type = #tpu.core_type<tc>, window_params = [{transform_indices = @transform_0, window_bounds = array<i64: 4, 16, 16>}, {transform_indices = @transform_1, window_bounds = array<i64: 4, 16, 16>}, {pipeline_mode = #tpu.pipeline_mode<synchronous>, transform_indices = @transform_2, window_bounds = array<i64: 16, 16>}, {pipeline_mode = #tpu.pipeline_mode<synchronous>, transform_indices = @transform_3, window_bounds = array<i64: 16, 16>}, {pipeline_mode = #tpu.pipeline_mode<synchronous>, transform_indices = @transform_4, window_bounds = array<i64: 64, 64>}, {pipeline_mode = #tpu.pipeline_mode<synchronous>, transform_indices = @transform_5, window_bounds = array<i64: 64, 64>}, {pipeline_mode = #tpu.pipeline_mode<synchronous>, transform_indices = @transform_6, window_bounds = array<i64: 4, 64>}, {transform_indices = @transform_7, window_bounds = array<i64: 1, 4, 128>}]} {
    %c0 = arith.constant 0 : index
    %c0_0 = arith.constant 0 : index
    %c0_1 = arith.constant 0 : index
    %0 = vector.load %arg1[%c0, %c0_0, %c0_1] : memref<4x16x16xf32, #tpu.memory_space<vmem>>, vector<4x16x16xf32>
    %1 = vector.shape_cast %0 : vector<4x16x16xf32> to vector<64x16xf32>
    %c0_2 = arith.constant 0 : index
    %c0_3 = arith.constant 0 : index
    %c0_4 = arith.constant 0 : index
    %2 = vector.load %arg2[%c0_2, %c0_3, %c0_4] : memref<4x16x16xf32, #tpu.memory_space<vmem>>, vector<4x16x16xf32>
    %3 = vector.shape_cast %2 : vector<4x16x16xf32> to vector<64x16xf32>
    %c0_5 = arith.constant 0 : index
    %c0_6 = arith.constant 0 : index
    %4 = vector.load %arg9[%c0_5, %c0_6] : memref<320x16xf32, #tpu.memory_space<vmem>>, vector<64x16xf32>
    tpu.vector_store %arg9[%c0_5, %c0_6], %1 {strides = array<i32>} : memref<320x16xf32, #tpu.memory_space<vmem>>, vector<64x16xf32>,
    %c64 = arith.constant 64 : index
    %c0_7 = arith.constant 0 : index
    %5 = vector.load %arg9[%c64, %c0_7] : memref<320x16xf32, #tpu.memory_space<vmem>>, vector<64x16xf32>
    tpu.vector_store %arg9[%c64, %c0_7], %3 {strides = array<i32>} : memref<320x16xf32, #tpu.memory_space<vmem>>, vector<64x16xf32>,
    %6 = arith.mulf %1, %1 : vector<64x16xf32>
    %c128 = arith.constant 128 : index
    %c0_8 = arith.constant 0 : index
    %7 = vector.load %arg9[%c128, %c0_8] : memref<320x16xf32, #tpu.memory_space<vmem>>, vector<64x16xf32>
    tpu.vector_store %arg9[%c128, %c0_8], %6 {strides = array<i32>} : memref<320x16xf32, #tpu.memory_space<vmem>>, vector<64x16xf32>,
    %8 = arith.mulf %3, %3 : vector<64x16xf32>
    %c192 = arith.constant 192 : index
    %c0_9 = arith.constant 0 : index
    %9 = vector.load %arg9[%c192, %c0_9] : memref<320x16xf32, #tpu.memory_space<vmem>>, vector<64x16xf32>
    tpu.vector_store %arg9[%c192, %c0_9], %8 {strides = array<i32>} : memref<320x16xf32, #tpu.memory_space<vmem>>, vector<64x16xf32>,
    %10 = arith.mulf %1, %3 : vector<64x16xf32>
    %c256 = arith.constant 256 : index
    %c0_10 = arith.constant 0 : index
    %11 = vector.load %arg9[%c256, %c0_10] : memref<320x16xf32, #tpu.memory_space<vmem>>, vector<64x16xf32>
    tpu.vector_store %arg9[%c256, %c0_10], %10 {strides = array<i32>} : memref<320x16xf32, #tpu.memory_space<vmem>>, vector<64x16xf32>,
    %c0_11 = arith.constant 0 : index
    %c0_12 = arith.constant 0 : index
    %12 = vector.load %arg9[%c0_11, %c0_12] : memref<320x16xf32, #tpu.memory_space<vmem>>, vector<320x16xf32>
    %13 = arith.truncf %12 : vector<320x16xf32> to vector<320x16xbf16>
    %14 = arith.extf %13 : vector<320x16xbf16> to vector<320x16xf32>
    %15 = arith.subf %12, %14 : vector<320x16xf32>
    %16 = arith.truncf %15 : vector<320x16xf32> to vector<320x16xbf16>
    %c0_13 = arith.constant 0 : index
    %c0_14 = arith.constant 0 : index
    %17 = vector.load %arg3[%c0_13, %c0_14] : memref<16x16xbf16, #tpu.memory_space<vmem>>, vector<16x16xbf16>
    %c0_15 = arith.constant 0 : index
    %c0_16 = arith.constant 0 : index
    %18 = vector.load %arg4[%c0_15, %c0_16] : memref<16x16xbf16, #tpu.memory_space<vmem>>, vector<16x16xbf16>
    %cst = arith.constant dense<0.000000e+00> : vector<320x16xf32>
    %19 = tpu.matmul %13, %17, %cst {dimension_numbers = #tpu.dot_dimension_numbers<[1], [0], [0], [1], [0, 0, 1, 1], [], []>} : vector<320x16xbf16>, vector<16x16xbf16>, vector<320x16xf32> -> vector<320x16xf32>
    %cst_17 = arith.constant dense<0.000000e+00> : vector<320x16xf32>
    %20 = tpu.matmul %16, %17, %cst_17 {dimension_numbers = #tpu.dot_dimension_numbers<[1], [0], [0], [1], [0, 0, 1, 1], [], []>} : vector<320x16xbf16>, vector<16x16xbf16>, vector<320x16xf32> -> vector<320x16xf32>
    %21 = arith.addf %19, %20 : vector<320x16xf32>
    %cst_18 = arith.constant dense<0.000000e+00> : vector<320x16xf32>
    %22 = tpu.matmul %13, %18, %cst_18 {dimension_numbers = #tpu.dot_dimension_numbers<[1], [0], [0], [1], [0, 0, 1, 1], [], []>} : vector<320x16xbf16>, vector<16x16xbf16>, vector<320x16xf32> -> vector<320x16xf32>
    %23 = arith.addf %21, %22 : vector<320x16xf32>
    %c0_19 = arith.constant 0 : index
    %c0_20 = arith.constant 0 : index
    %24 = vector.load %arg5[%c0_19, %c0_20] : memref<64x64xbf16, #tpu.memory_space<vmem>>, vector<64x64xbf16>
    %c0_21 = arith.constant 0 : index
    %c0_22 = arith.constant 0 : index
    %25 = vector.load %arg6[%c0_21, %c0_22] : memref<64x64xbf16, #tpu.memory_space<vmem>>, vector<64x64xbf16>
    %26 = vector.extract_strided_slice %23 {offsets = [0, 0], sizes = [64, 16], strides = [1, 1]} : vector<320x16xf32> to vector<64x16xf32>
    %27 = arith.truncf %26 : vector<64x16xf32> to vector<64x16xbf16>
    %28 = arith.extf %27 : vector<64x16xbf16> to vector<64x16xf32>
    %29 = arith.subf %26, %28 : vector<64x16xf32>
    %30 = arith.truncf %29 : vector<64x16xf32> to vector<64x16xbf16>
    %cst_23 = arith.constant dense<0.000000e+00> : vector<64x16xf32>
    %31 = tpu.matmul %24, %27, %cst_23 {dimension_numbers = #tpu.dot_dimension_numbers<[1], [0], [0], [1], [0, 0, 1, 1], [], []>} : vector<64x64xbf16>, vector<64x16xbf16>, vector<64x16xf32> -> vector<64x16xf32>
    %cst_24 = arith.constant dense<0.000000e+00> : vector<64x16xf32>
    %32 = tpu.matmul %25, %27, %cst_24 {dimension_numbers = #tpu.dot_dimension_numbers<[1], [0], [0], [1], [0, 0, 1, 1], [], []>} : vector<64x64xbf16>, vector<64x16xbf16>, vector<64x16xf32> -> vector<64x16xf32>
    %33 = arith.addf %31, %32 : vector<64x16xf32>
    %cst_25 = arith.constant dense<0.000000e+00> : vector<64x16xf32>
    %34 = tpu.matmul %24, %30, %cst_25 {dimension_numbers = #tpu.dot_dimension_numbers<[1], [0], [0], [1], [0, 0, 1, 1], [], []>} : vector<64x64xbf16>, vector<64x16xbf16>, vector<64x16xf32> -> vector<64x16xf32>
    %35 = arith.addf %33, %34 : vector<64x16xf32>
    %36 = vector.extract_strided_slice %23 {offsets = [64, 0], sizes = [64, 16], strides = [1, 1]} : vector<320x16xf32> to vector<64x16xf32>
    %37 = arith.truncf %36 : vector<64x16xf32> to vector<64x16xbf16>
    %38 = arith.extf %37 : vector<64x16xbf16> to vector<64x16xf32>
    %39 = arith.subf %36, %38 : vector<64x16xf32>
    %40 = arith.truncf %39 : vector<64x16xf32> to vector<64x16xbf16>
    %cst_26 = arith.constant dense<0.000000e+00> : vector<64x16xf32>
    %41 = tpu.matmul %24, %37, %cst_26 {dimension_numbers = #tpu.dot_dimension_numbers<[1], [0], [0], [1], [0, 0, 1, 1], [], []>} : vector<64x64xbf16>, vector<64x16xbf16>, vector<64x16xf32> -> vector<64x16xf32>
    %cst_27 = arith.constant dense<0.000000e+00> : vector<64x16xf32>
    %42 = tpu.matmul %25, %37, %cst_27 {dimension_numbers = #tpu.dot_dimension_numbers<[1], [0], [0], [1], [0, 0, 1, 1], [], []>} : vector<64x64xbf16>, vector<64x16xbf16>, vector<64x16xf32> -> vector<64x16xf32>
    %43 = arith.addf %41, %42 : vector<64x16xf32>
    %cst_28 = arith.constant dense<0.000000e+00> : vector<64x16xf32>
    %44 = tpu.matmul %24, %40, %cst_28 {dimension_numbers = #tpu.dot_dimension_numbers<[1], [0], [0], [1], [0, 0, 1, 1], [], []>} : vector<64x64xbf16>, vector<64x16xbf16>, vector<64x16xf32> -> vector<64x16xf32>
    %45 = arith.addf %43, %44 : vector<64x16xf32>
    %46 = vector.extract_strided_slice %23 {offsets = [128, 0], sizes = [64, 16], strides = [1, 1]} : vector<320x16xf32> to vector<64x16xf32>
    %47 = arith.truncf %46 : vector<64x16xf32> to vector<64x16xbf16>
    %48 = arith.extf %47 : vector<64x16xbf16> to vector<64x16xf32>
    %49 = arith.subf %46, %48 : vector<64x16xf32>
    %50 = arith.truncf %49 : vector<64x16xf32> to vector<64x16xbf16>
    %cst_29 = arith.constant dense<0.000000e+00> : vector<64x16xf32>
    %51 = tpu.matmul %24, %47, %cst_29 {dimension_numbers = #tpu.dot_dimension_numbers<[1], [0], [0], [1], [0, 0, 1, 1], [], []>} : vector<64x64xbf16>, vector<64x16xbf16>, vector<64x16xf32> -> vector<64x16xf32>
    %cst_30 = arith.constant dense<0.000000e+00> : vector<64x16xf32>
    %52 = tpu.matmul %25, %47, %cst_30 {dimension_numbers = #tpu.dot_dimension_numbers<[1], [0], [0], [1], [0, 0, 1, 1], [], []>} : vector<64x64xbf16>, vector<64x16xbf16>, vector<64x16xf32> -> vector<64x16xf32>
    %53 = arith.addf %51, %52 : vector<64x16xf32>
    %cst_31 = arith.constant dense<0.000000e+00> : vector<64x16xf32>
    %54 = tpu.matmul %24, %50, %cst_31 {dimension_numbers = #tpu.dot_dimension_numbers<[1], [0], [0], [1], [0, 0, 1, 1], [], []>} : vector<64x64xbf16>, vector<64x16xbf16>, vector<64x16xf32> -> vector<64x16xf32>
    %55 = arith.addf %53, %54 : vector<64x16xf32>
    %56 = vector.extract_strided_slice %23 {offsets = [192, 0], sizes = [64, 16], strides = [1, 1]} : vector<320x16xf32> to vector<64x16xf32>
    %57 = arith.truncf %56 : vector<64x16xf32> to vector<64x16xbf16>
    %58 = arith.extf %57 : vector<64x16xbf16> to vector<64x16xf32>
    %59 = arith.subf %56, %58 : vector<64x16xf32>
    %60 = arith.truncf %59 : vector<64x16xf32> to vector<64x16xbf16>
    %cst_32 = arith.constant dense<0.000000e+00> : vector<64x16xf32>
    %61 = tpu.matmul %24, %57, %cst_32 {dimension_numbers = #tpu.dot_dimension_numbers<[1], [0], [0], [1], [0, 0, 1, 1], [], []>} : vector<64x64xbf16>, vector<64x16xbf16>, vector<64x16xf32> -> vector<64x16xf32>
    %cst_33 = arith.constant dense<0.000000e+00> : vector<64x16xf32>
    %62 = tpu.matmul %25, %57, %cst_33 {dimension_numbers = #tpu.dot_dimension_numbers<[1], [0], [0], [1], [0, 0, 1, 1], [], []>} : vector<64x64xbf16>, vector<64x16xbf16>, vector<64x16xf32> -> vector<64x16xf32>
    %63 = arith.addf %61, %62 : vector<64x16xf32>
    %cst_34 = arith.constant dense<0.000000e+00> : vector<64x16xf32>
    %64 = tpu.matmul %24, %60, %cst_34 {dimension_numbers = #tpu.dot_dimension_numbers<[1], [0], [0], [1], [0, 0, 1, 1], [], []>} : vector<64x64xbf16>, vector<64x16xbf16>, vector<64x16xf32> -> vector<64x16xf32>
    %65 = arith.addf %63, %64 : vector<64x16xf32>
    %66 = vector.extract_strided_slice %23 {offsets = [256, 0], sizes = [64, 16], strides = [1, 1]} : vector<320x16xf32> to vector<64x16xf32>
    %67 = arith.truncf %66 : vector<64x16xf32> to vector<64x16xbf16>
    %68 = arith.extf %67 : vector<64x16xbf16> to vector<64x16xf32>
    %69 = arith.subf %66, %68 : vector<64x16xf32>
    %70 = arith.truncf %69 : vector<64x16xf32> to vector<64x16xbf16>
    %cst_35 = arith.constant dense<0.000000e+00> : vector<64x16xf32>
    %71 = tpu.matmul %24, %67, %cst_35 {dimension_numbers = #tpu.dot_dimension_numbers<[1], [0], [0], [1], [0, 0, 1, 1], [], []>} : vector<64x64xbf16>, vector<64x16xbf16>, vector<64x16xf32> -> vector<64x16xf32>
    %cst_36 = arith.constant dense<0.000000e+00> : vector<64x16xf32>
    %72 = tpu.matmul %25, %67, %cst_36 {dimension_numbers = #tpu.dot_dimension_numbers<[1], [0], [0], [1], [0, 0, 1, 1], [], []>} : vector<64x64xbf16>, vector<64x16xbf16>, vector<64x16xf32> -> vector<64x16xf32>
    %73 = arith.addf %71, %72 : vector<64x16xf32>
    %cst_37 = arith.constant dense<0.000000e+00> : vector<64x16xf32>
    %74 = tpu.matmul %24, %70, %cst_37 {dimension_numbers = #tpu.dot_dimension_numbers<[1], [0], [0], [1], [0, 0, 1, 1], [], []>} : vector<64x64xbf16>, vector<64x16xbf16>, vector<64x16xf32> -> vector<64x16xf32>
    %75 = arith.addf %73, %74 : vector<64x16xf32>
    %76 = arith.mulf %35, %35 : vector<64x16xf32>
    %77 = arith.mulf %45, %45 : vector<64x16xf32>
    %78 = arith.mulf %35, %45 : vector<64x16xf32>
    %79 = arith.subf %55, %76 : vector<64x16xf32>
    %80 = arith.subf %65, %77 : vector<64x16xf32>
    %81 = arith.subf %75, %78 : vector<64x16xf32>
    %cst_38 = arith.constant 2.000000e+00 : f32
    %82 = vector.broadcast %cst_38 : f32 to vector<64x16xf32>
    %83 = arith.mulf %82, %78 : vector<64x16xf32>
    %cst_39 = arith.constant 9.99999974E-5 : f32
    %84 = vector.broadcast %cst_39 : f32 to vector<64x16xf32>
    %85 = arith.addf %83, %84 : vector<64x16xf32>
    %cst_40 = arith.constant 2.000000e+00 : f32
    %86 = vector.broadcast %cst_40 : f32 to vector<64x16xf32>
    %87 = arith.mulf %86, %81 : vector<64x16xf32>
    %cst_41 = arith.constant 8.99999984E-4 : f32
    %88 = vector.broadcast %cst_41 : f32 to vector<64x16xf32>
    %89 = arith.addf %87, %88 : vector<64x16xf32>
    %90 = arith.mulf %85, %89 : vector<64x16xf32>
    %91 = arith.addf %76, %77 : vector<64x16xf32>
    %cst_42 = arith.constant 9.99999974E-5 : f32
    %92 = vector.broadcast %cst_42 : f32 to vector<64x16xf32>
    %93 = arith.addf %91, %92 : vector<64x16xf32>
    %94 = arith.addf %79, %80 : vector<64x16xf32>
    %cst_43 = arith.constant 8.99999984E-4 : f32
    %95 = vector.broadcast %cst_43 : f32 to vector<64x16xf32>
    %96 = arith.addf %94, %95 : vector<64x16xf32>
    %97 = arith.mulf %93, %96 : vector<64x16xf32>
    %98 = tpu.reciprocal %97 {approx = true} : vector<64x16xf32> -> vector<64x16xf32>
    %99 = arith.mulf %97, %98 : vector<64x16xf32>
    %cst_44 = arith.constant 2.000000e+00 : f32
    %100 = vector.broadcast %cst_44 : f32 to vector<64x16xf32>
    %101 = arith.subf %100, %99 : vector<64x16xf32>
    %102 = arith.mulf %98, %101 : vector<64x16xf32>
    %103 = arith.mulf %90, %102 : vector<64x16xf32>
    %104 = arith.truncf %103 : vector<64x16xf32> to vector<64x16xbf16>
    %105 = arith.extf %104 : vector<64x16xbf16> to vector<64x16xf32>
    %106 = arith.subf %103, %105 : vector<64x16xf32>
    %107 = arith.truncf %106 : vector<64x16xf32> to vector<64x16xbf16>
    %c0_45 = arith.constant 0 : index
    %c0_46 = arith.constant 0 : index
    %108 = vector.load %arg7[%c0_45, %c0_46] : memref<4x64xbf16, #tpu.memory_space<vmem>>, vector<4x64xbf16>
    %cst_47 = arith.constant dense<0.000000e+00> : vector<4x16xf32>
    %109 = tpu.matmul %108, %104, %cst_47 {dimension_numbers = #tpu.dot_dimension_numbers<[1], [0], [0], [1], [0, 0, 1, 1], [], []>} : vector<4x64xbf16>, vector<64x16xbf16>, vector<4x16xf32> -> vector<4x16xf32>
    %cst_48 = arith.constant dense<0.000000e+00> : vector<4x16xf32>
    %110 = tpu.matmul %108, %107, %cst_48 {dimension_numbers = #tpu.dot_dimension_numbers<[1], [0], [0], [1], [0, 0, 1, 1], [], []>} : vector<4x64xbf16>, vector<64x16xbf16>, vector<4x16xf32> -> vector<4x16xf32>
    %111 = arith.addf %109, %110 : vector<4x16xf32>
    %cst_49 = arith.constant dense<0.000000e+00> : vector<4xf32>
    %112 = vector.multi_reduction <add>, %111, %cst_49 [1] : vector<4x16xf32> to vector<4xf32>
    %113 = vector.shape_cast %112 : vector<4xf32> to vector<4x1xf32>
    %114 = vector.shape_cast %113 : vector<4x1xf32> to vector<4x1xf32>
    %115 = vector.broadcast %114 : vector<4x1xf32> to vector<4x128xf32>
    %c0_50 = arith.constant 0 : index
    %c0_51 = arith.constant 0 : index
    %c0_52 = arith.constant 0 : index
    %116 = vector.load %arg8[%c0_50, %c0_51, %c0_52] : memref<1x4x128xf32, #tpu.memory_space<vmem>>, vector<1x4x128xf32>
    %117 = vector.shape_cast %116 : vector<1x4x128xf32> to vector<4x128xf32>
    %118 = vector.shape_cast %115 : vector<4x128xf32> to vector<1x4x128xf32>
    tpu.vector_store %arg8[%c0_50, %c0_51, %c0_52], %118 {strides = array<i32>} : memref<1x4x128xf32, #tpu.memory_space<vmem>>, vector<1x4x128xf32>,
    return
  }
  func.func @transform_0(%arg0: i32) -> (i32, i32, i32) {
    %c0_i32 = arith.constant 0 : i32
    %c0_i32_0 = arith.constant 0 : i32
    %c0_i32_1 = arith.constant 0 : i32
    return %arg0, %c0_i32, %c0_i32_0 : i32, i32, i32
  }
  func.func @transform_1(%arg0: i32) -> (i32, i32, i32) {
    %c0_i32 = arith.constant 0 : i32
    %c0_i32_0 = arith.constant 0 : i32
    %c0_i32_1 = arith.constant 0 : i32
    return %arg0, %c0_i32, %c0_i32_0 : i32, i32, i32
  }
  func.func @transform_2(%arg0: i32) -> (i32, i32) {
    %c0_i32 = arith.constant 0 : i32
    %c0_i32_0 = arith.constant 0 : i32
    %c0_i32_1 = arith.constant 0 : i32
    return %c0_i32, %c0_i32_0 : i32, i32
  }
  func.func @transform_3(%arg0: i32) -> (i32, i32) {
    %c0_i32 = arith.constant 0 : i32
    %c0_i32_0 = arith.constant 0 : i32
    %c0_i32_1 = arith.constant 0 : i32
    return %c0_i32, %c0_i32_0 : i32, i32
  }
  func.func @transform_4(%arg0: i32) -> (i32, i32) {
    %c0_i32 = arith.constant 0 : i32
    %c0_i32_0 = arith.constant 0 : i32
    %c0_i32_1 = arith.constant 0 : i32
    return %c0_i32, %c0_i32_0 : i32, i32
  }
  func.func @transform_5(%arg0: i32) -> (i32, i32) {
    %c0_i32 = arith.constant 0 : i32
    %c0_i32_0 = arith.constant 0 : i32
    %c0_i32_1 = arith.constant 0 : i32
    return %c0_i32, %c0_i32_0 : i32, i32
  }
  func.func @transform_6(%arg0: i32) -> (i32, i32) {
    %c0_i32 = arith.constant 0 : i32
    %c0_i32_0 = arith.constant 0 : i32
    %c0_i32_1 = arith.constant 0 : i32
    return %c0_i32, %c0_i32_0 : i32, i32
  }
  func.func @transform_7(%arg0: i32) -> (i32, i32, i32) {
    %c0_i32 = arith.constant 0 : i32
    %c0_i32_0 = arith.constant 0 : i32
    %c0_i32_1 = arith.constant 0 : i32
    return %arg0, %c0_i32, %c0_i32_0 : i32, i32, i32
  }
}

</mosaic_0001>

<bundles_post_ra>
// kernel: tpu_custom_call.1
= control target key start
LH: loop header
LB: loop body
LE: loop exit
PB: predicated region body
PF: predicated region fallthrough
CT: control target
= control target key end

     0   :  { %s5366_s0 = inlined_call_operand.hbm [shape: f32[8,16,16], index: 0, kind: input, shape index: {}]   ;;  %s5367_s1 = inlined_call_operand.hbm [shape: f32[8,16,16], index: 1, kind: input, shape index: {}]   ;;  %s5368_s2 = inlined_call_operand.hbm [shape: bf16[16,16], index: 2, kind: input, shape index: {}]   ;;  %s5369_s3 = inlined_call_operand.vmem [shape: bf16[16,16], index: 3, kind: input, shape index: {}]   ;;  %s5370_s4 = inlined_call_operand.hbm [shape: bf16[64,64], index: 4, kind: input, shape index: {}]   ;;  %s5371_s5 = inlined_call_operand.hbm [shape: bf16[64,64], index: 5, kind: input, shape index: {}]   ;;  %s5372_s6 = inlined_call_operand.vmem [shape: bf16[4,64], index: 6, kind: input, shape index: {}]   ;;  %s5373_s7 = inlined_call_operand.hbm [shape: f32[2,4,128], index: 7, kind: output, shape index: {}]  }
   0x1   :  { %5378 = sst [smem:[#allocation19_spill]] %s5366_s0 }
   0x2   :  { %5379 = sst [smem:[#allocation20_spill]] %s5368_s2 }
   0x3   :  { %5380 = sst [smem:[#allocation21_spill]] %s5370_s4 }
   0x4   :  { %12 = vsyncpa [#allocation4], 0 }
   0x5   :  { %14 = vsyncpa [#allocation4 + $0x1], 0 }
   0x6   :  { %15 = vsyncpa [#allocation7], 0 }
   0x7   :  { %17 = vsyncpa [#allocation7 + $0x1], 0 }
   0x8   :  { %18 = vsyncpa [#allocation10], 0 }
   0x9   :  { %19 = vsyncpa [#allocation5], 0 }
   0xa   :  { %21 = vsyncpa [#allocation5 + $0x1], 0  ;;  %s4308_s24 = smov 0   ;;  %s4310_s25 = smov 0  }
   0xb   :  { %s4312_s26 = smov 0   ;;  %s4314_s27 = smov 0  }
   0xc LB: > { %s4329_s28 = sadd.s32 4294967295, %s4254_s27   ;;  %s3013_s29 = sadd.s32 4294967294, %s4254_s27   ;;  %s4254_s27 = sphi %s4314_s27, %s5405_s27   ;;  %s4250_s26 = sphi %s4312_s26, %s5404_s26   ;;  %s4246_s25 = sphi %s4310_s25, %s5403_s25   ;;  %s4242_s24 = sphi %s4308_s24, %s5402_s24  }
   0xd   : > { %p47_p0 = scmp.ne.s32.totalorder %s4246_s25, %s4242_s24  ;;  %p5374_p1 = scmp.eq.s32.totalorder %s4329_s28, 0 }
   0xe   : > { %p208_p3 = scmp.eq.s32.totalorder %s3013_s29, 1  ;;  %p3014_p5 = scmp.ge.s32.totalorder %s4254_s27, 1 }
   0xf   : > { %p4338_p4 = por %p5374_p1, %p47_p0  ;;  %p215_p7 = scmp.lt.s32.totalorder %s4254_s27, 3 }
  0x10   : > { %p4343_p6 = por %p208_p3, %p47_p0  ;;  %s4256_s10 = smov [#allocation8]  }
  0x11   : > { %s5381_s30 = scalar_select %p4338_p4, 1, 0 }
  0x12   : > { %s5382_s8 = scalar_select %p4343_p6, 1, 0 }
  0x13   : > { %p4348_p8 = pnand %p3014_p5, %p215_p7  ;;  %s227_s11 = sshll.u32 %s4256_s10, 4  ;;  %s4352_s11 = int_to_ptr.vmem [resolvable:$true] %s227_s11 }
  0x14   : > { %5383 = sst [smem:[#allocation18_spill]] %s5382_s8  ;;  %s4257_s13 = smov [#allocation9]  }
  0x15   : > { %s5384_s9 = scalar_select %p4348_p8, 1, 0 }
  0x16   : > { %p3936_p9 = pneg %p4348_p8  ;;  %s243_s14 = sshll.u32 %s4257_s13, 4  ;;  %s4363_s14 = int_to_ptr.vmem [resolvable:$true] %s243_s14 }
  0x17   : > { %s4258_s15 = smov [#allocation11]   ;;  %s5386_s2 = sld [smem:[#allocation20_spill]] }
  0x18   : > { %p4359_p11 = pnand %p3936_p9, %p5374_p1  ;;  %s4365_s16 = sshll.u32 %s4258_s15, 4  ;;  %s257_s16 = int_to_ptr.vmem [resolvable:$true] %s4365_s16 }
  0x1a   : > { %p4375_p13 = pneg %p4359_p11 }
  0x1d   : > { %s4032_s19 = scalar_lea.hbm %s5386_s2, 128 }
  0x1e   : > { %p4033_p12 = scmp.ne.s32.totalorder %s5386_s2, %s4032_s19  ;;  %p4039_p5 = scmp.lt.u32.totalorder %s4032_s19, %s5386_s2 }
  0x20   : > { %p4035_p0 = pnand %p4375_p13, %p4033_p12 }
  0x22   : > { %p4036_p3 = pneg %p4035_p0 }
  0x24   : > { %p4041_p7 = pnand %p4039_p5, %p4036_p3 }
  0x26   : > { %4044 = shalt.err (!%p4041_p7)
}
  0x27   : > { %s4045_s10 = scalar_lea.vmem %s4352_s11, 128  ;;  %p4053_p2 = scmp.lt.s32.totalorder %s4352_s11, %s4352_s11 }
  0x28   : > { %p4046_p9 = scmp.ne.s32.totalorder %s4352_s11, %s4045_s10  ;;  %p4054_p6 = scmp.lt.s32.totalorder %s4045_s10, %s4045_s10 }
  0x2a   : > { %p4048_p10 = pnand %p4046_p9, %p4375_p13  ;;  %p4055_p12 = por %p4054_p6, %p4053_p2 }
  0x2c   : > { %p4049_p1 = pneg %p4048_p10 }
  0x2e   : > { %p4056_p0 = pnand %p4055_p12, %p4049_p1 }
  0x30   : > { %4059 = shalt.err (!%p4056_p0)
}
  0x31   : > { %s4259_s13 = smov 64   ;;  %s4260_s15 = smov 4  }
  0x32   : > { %3939 = dma.hbm_to_vmem [thread:$0]  (!%p4359_p11), %s5386_s2, 128, %s4352_s11, [#allocation7], %s4259_s13, %s4259_s13, %s4260_s15  }
  0x33   : > { %s5388_s4 = sld [smem:[#allocation21_spill]] }
  0x39   : > { %s4060_s21 = scalar_lea.hbm %s5388_s4, 512 }
  0x3a   : > { %p4061_p1 = scmp.ne.s32.totalorder %s5388_s4, %s4060_s21  ;;  %p4067_p10 = scmp.lt.u32.totalorder %s4060_s21, %s5388_s4 }
  0x3c   : > { %p4063_p2 = pnand %p4061_p1, %p4375_p13 }
  0x3e   : > { %p4064_p6 = pneg %p4063_p2 }
  0x40   : > { %p4069_p3 = pnand %p4067_p10, %p4064_p6 }
  0x42   : > { %4072 = shalt.err (!%p4069_p3)
}
  0x43   : > { %s4073_s11 = scalar_lea.vmem %s4363_s14, 512  ;;  %p4081_p12 = scmp.lt.s32.totalorder %s4363_s14, %s4363_s14 }
  0x44   : > { %p4074_p5 = scmp.ne.s32.totalorder %s4363_s14, %s4073_s11  ;;  %p4082_p0 = scmp.lt.s32.totalorder %s4073_s11, %s4073_s11 }
  0x46   : > { %p4076_p7 = pnand %p4074_p5, %p4375_p13  ;;  %p4083_p1 = por %p4082_p0, %p4081_p12 }
  0x48   : > { %p4077_p9 = pneg %p4076_p7 }
  0x4a   : > { %p4084_p2 = pnand %p4083_p1, %p4077_p9 }
  0x4c   : > { %4087 = shalt.err (!%p4084_p2)
}
  0x4d   : > { %3942 = dma.hbm_to_vmem [thread:$0]  (!%p4359_p11), %s5388_s4, 512, %s4363_s14, [#allocation10], %s4259_s13, %s4259_s13, %s4260_s15  }
  0x4e   : > { %s4088_s20 = scalar_lea.hbm %s5371_s5, 512 }
  0x4f   : > { %p4089_p6 = scmp.ne.s32.totalorder %s5371_s5, %s4088_s20  ;;  %p4095_p5 = scmp.lt.u32.totalorder %s4088_s20, %s5371_s5 }
  0x51   : > { %p4091_p10 = pnand %p4089_p6, %p4375_p13 }
  0x53   : > { %p4092_p3 = pneg %p4091_p10 }
  0x55   : > { %p4097_p7 = pnand %p4095_p5, %p4092_p3 }
  0x57   : > { %4100 = shalt.err (!%p4097_p7)
}
  0x58   : > { %s4101_s11 = scalar_lea.vmem %s257_s16, 512  ;;  %p4109_p1 = scmp.lt.s32.totalorder %s257_s16, %s257_s16 }
  0x59   : > { %p4102_p9 = scmp.ne.s32.totalorder %s257_s16, %s4101_s11  ;;  %p4110_p2 = scmp.lt.s32.totalorder %s4101_s11, %s4101_s11 }
  0x5b   : > { %p4104_p12 = pnand %p4102_p9, %p4375_p13  ;;  %p4111_p4 = por %p4110_p2, %p4109_p1 }
  0x5d   : > { %p4105_p0 = pneg %p4104_p12 }
  0x5f   : > { %p4112_p8 = pnand %p4111_p4, %p4105_p0 }
  0x61   : > { %4115 = shalt.err (!%p4112_p8)
}
  0x62   : > { %3945 = dma.hbm_to_vmem [thread:$0]  (!%p4359_p11), %s5371_s5, 512, %s257_s16, [#allocation10], %s4259_s13, %s4259_s13, %s4260_s15  }
  0x63   : > { %s4448_s12 = sadd.s32 1, %s4254_s27   ;;  %s34_s17 = sadd.s32 1, %s4250_s26 }
  0x64   : > { %s31_s22 = ssub.s32 %s4254_s27, %s4448_s12  ;;  %p41_p8 = scmp.ne.s32.totalorder %s4250_s26, %s4246_s25 }
  0x65   : > { %p32_p4 = scmp.eq.s32.totalorder %s31_s22, 0  ;;  %p42_p13 = scmp.eq.s32.totalorder %s4254_s27, 0 }
  0x66   : > { %p3960_p6 = scmp.lt.s32.totalorder %s4254_s27, 2  ;;  %p5389_p3 = scmp.eq.s32.totalorder %s4329_s28, 1 }
  0x67   : > { %s4458_s18 = scalar_select %p32_p4, %s4250_s26, %s34_s17  }
  0x68   : > { %p43_p10 = por %p42_p13, %p41_p8  ;;  %p4462_p5 = por %p5389_p3, %p41_p8 }
  0x69   : > { %s273_s20 = sand.u32 1, %s4250_s26   ;;  %s3171_s21 = sshll.u32 %s4254_s27, 10 }
  0x6a   : > { %s4468_s16 = sshll.u32 %s273_s20, 6  ;;  %s5391_s0 = sld [smem:[#allocation19_spill]] }
  0x6b   : > { %s277_s29 = scalar_lea.vmem [#allocation3], %s4468_s16  ;;  %p4478_p11 = pnand %p3960_p6, %p43_p10 }
  0x6c   : > { %s285_s10 = sshll.u32 %s277_s29, 4  ;;  %s4484_s14 = scalar_lea.sflag [#allocation4], %s273_s20  ;;  %s4482_s10 = int_to_ptr.vmem [resolvable:$true] %s285_s10 }
  0x6d   : > { %p4118_p9 = pneg %p4478_p11 }
  0x70   : > { %s4475_s23 = scalar_lea.hbm %s5391_s0, %s3171_s21  ;;  %s4121_s13 = scalar_lea.hbm %s5391_s0, 2048 }
  0x71   : > { %s4116_s8 = scalar_lea.hbm %s4475_s23, 1024  ;;  %p4122_p1 = scmp.lt.u32.totalorder %s4475_s23, %s5391_s0 }
  0x72   : > { %p4117_p7 = scmp.ne.s32.totalorder %s4475_s23, %s4116_s8  ;;  %p4123_p2 = scmp.lt.u32.totalorder %s4121_s13, %s4116_s8 }
  0x73   : > { %p4125_p8 = scmp.lt.u32.totalorder %s4116_s8, %s4475_s23 }
  0x74   : > { %p4119_p12 = pnand %p4118_p9, %p4117_p7  ;;  %p4124_p4 = por %p4123_p2, %p4122_p1 }
  0x76   : > { %p4120_p0 = pneg %p4119_p12  ;;  %p4126_p13 = por %p4125_p8, %p4124_p4 }
  0x78   : > { %p4127_p6 = pnand %p4126_p13, %p4120_p0 }
  0x7a   : > { %4130 = shalt.err (!%p4127_p6)
}
  0x7b   : > { %s4131_s20 = scalar_lea.vmem %s4482_s10, 1024  ;;  %s4261_s22 = smov [#allocation3]  }
  0x7c   : > { %p4132_p10 = scmp.ne.s32.totalorder %s4482_s10, %s4131_s20  ;;  %s4136_s17 = sshll.u32 %s4261_s22, 4  ;;  %s4137_s17 = int_to_ptr.vmem [resolvable:$false] %s4136_s17 }
  0x7d   : > { %s4138_s15 = scalar_lea.vmem %s4137_s17, 2048  ;;  %p4139_p12 = scmp.lt.s32.totalorder %s4482_s10, %s4137_s17 }
  0x7e   : > { %p4134_p3 = pnand %p4132_p10, %p4118_p9  ;;  %p4140_p1 = scmp.lt.s32.totalorder %s4138_s15, %s4131_s20 }
  0x80   : > { %p4135_p7 = pneg %p4134_p3  ;;  %p4141_p2 = por %p4140_p1, %p4139_p12 }
  0x82   : > { %p4142_p4 = pnand %p4141_p2, %p4135_p7 }
  0x84   : > { %4145 = shalt.err (!%p4142_p4)
}
  0x85   : > { %s4262_s8 = smov 128   ;;  %s4263_s13 = smov 8  }
  0x86   : > { %3949 = dma.hbm_to_vmem [thread:$0]  (!%p4478_p11), %s4475_s23, 1024, %s4482_s10, %s4484_s14, %s4262_s8, %s4262_s8, %s4263_s13  }
  0x87   : > { %s4520_s22 = scalar_lea.hbm %s5367_s1, %s3171_s21  ;;  %s299_s17 = scalar_lea.vmem [#allocation6], %s4468_s16 }
  0x88   : > { %s307_s15 = sshll.u32 %s299_s17, 4  ;;  %s295_s0 = sand.u32 1, %s4254_s27   ;;  %s4524_s15 = int_to_ptr.vmem [resolvable:$true] %s307_s15 }
  0x89   : > { %s4526_s2 = scalar_lea.sflag [#allocation7], %s295_s0  ;;  %s4146_s4 = scalar_lea.hbm %s4520_s22, 1024 }
  0x8a   : > { %p4147_p0 = scmp.ne.s32.totalorder %s4520_s22, %s4146_s4  ;;  %s4151_s10 = scalar_lea.hbm %s5367_s1, 2048 }
  0x8b   : > { %p4152_p6 = scmp.lt.u32.totalorder %s4520_s22, %s5367_s1  ;;  %p4153_p10 = scmp.lt.u32.totalorder %s4151_s10, %s4146_s4 }
  0x8c   : > { %p4149_p8 = pnand %p4147_p0, %p4118_p9  ;;  %p4155_p7 = scmp.lt.u32.totalorder %s4146_s4, %s4520_s22 }
  0x8d   : > { %p4154_p3 = por %p4153_p10, %p4152_p6 }
  0x8e   : > { %p4150_p13 = pneg %p4149_p8 }
  0x8f   : > { %p4156_p12 = por %p4155_p7, %p4154_p3 }
  0x91   : > { %p4157_p1 = pnand %p4156_p12, %p4150_p13 }
  0x93   : > { %4160 = shalt.err (!%p4157_p1)
}
  0x94   : > { %s4161_s0 = scalar_lea.vmem %s4524_s15, 1024  ;;  %s4264_s16 = smov [#allocation6]  }
  0x95   : > { %p4162_p2 = scmp.ne.s32.totalorder %s4524_s15, %s4161_s0  ;;  %s4166_s20 = sshll.u32 %s4264_s16, 4  ;;  %s4167_s20 = int_to_ptr.vmem [resolvable:$false] %s4166_s20 }
  0x96   : > { %s4168_s17 = scalar_lea.vmem %s4167_s20, 2048  ;;  %p4169_p8 = scmp.lt.s32.totalorder %s4524_s15, %s4167_s20 }
  0x97   : > { %p4164_p4 = pnand %p4162_p2, %p4118_p9  ;;  %p4170_p6 = scmp.lt.s32.totalorder %s4168_s17, %s4161_s0 }
  0x99   : > { %p4165_p0 = pneg %p4164_p4  ;;  %p4171_p10 = por %p4170_p6, %p4169_p8 }
  0x9b   : > { %p4172_p3 = pnand %p4171_p10, %p4165_p0 }
  0x9d   : > { %4175 = shalt.err (!%p4172_p3)
}
  0x9e   : > { %3952 = dma.hbm_to_vmem [thread:$0]  (!%p4478_p11), %s4520_s22, 1024, %s4524_s15, %s4526_s2, %s4262_s8, %s4262_s8, %s4263_s13  }
  0x9f   : > { %p5393_p9 = scmp.ne.s32.totalorder %s5384_s9, 0 }
  0xa0   : > { %s4558_s4 = sand.u32 (!%p5393_p9), 1, %s4246_s25   ;;  %p5394_p13 = scmp.ne.s32.totalorder (!%p5393_p9), %s5381_s30, 0 }
  0xa1   : > { %319 = sbr.rel (%p5393_p9) target bundleno = 1435 (0x59b), region = 48  ;;  %s3028_s23 = sshll.u32 (!%p5393_p9), %s4558_s4, 6 }
  0xa2   : > { %s322_s21 = scalar_lea.sflag (!%p5393_p9), [#allocation4], %s4558_s4  ;;  %s4562_s10 = scalar_lea.vmem (!%p5393_p9), [#allocation3], %s3028_s23 }
  0xa8   : > { %4221 = dma.done.wait (%p5394_p13), %s322_s21, 1024  }
  0xa9   : > { %4223 = vsyncadd (%p5394_p13), %s322_s21, 4294966272  ;;  %s330_s2 = sand.u32 1, %s4329_s28   ;;  %s4569_s11 = scalar_lea.vmem [#allocation6], %s3028_s23 }
  0xaa   : > { %s331_s9 = scalar_lea.sflag [#allocation7], %s330_s2 }
  0xab   : > { %4225 = dma.done.wait (%p5394_p13), %s331_s9, 1024  }
  0xac   : > { %4227 = vsyncadd (%p5394_p13), %s331_s9, 4294966272  ;;  %p5395_p11 = scmp.eq.s32.totalorder %s4329_s28, 0 }
  0xae   : > { %4229 = dma.done.wait (%p5395_p11), [#allocation7], 128   ;;  %p5396_p7 = pmov %p5395_p11 }
  0xb0   : > { %4231 = vsyncadd (%p5396_p7), [#allocation7], 4294967168  ;;  %p5397_p12 = pmov %p5396_p7 }
  0xb1   : > { %p5398_p1 = pmov %p5396_p7 }
  0xb2   : > { %4233 = dma.done.wait (%p5397_p12), [#allocation10], 1024  }
  0xb3   : > { %4235 = vsyncadd (%p5398_p1), [#allocation10], 4294966272  ;;  %vm401_vm0 = vcmask 130048   ;;  %v4583_v0 = vld [vmem:[#allocation8] sm:$0xff]   ;;  %v386_v2 = vld [vmem:[%s4562_s10 + $0x8] sm:$0xff]  ;;  %vm1441_vm1 = vcmask 523264  }
  0xb4   : > { %v385_v1 = vld [vmem:[%s4562_s10] sm:$0xff]  ;;  %3367 = vmatprep.subr.bf16.mxu0 %v4583_v0  ;;  %v394_v4 = vld [vmem:[%s4569_s11 + $0x8] sm:$0xff]  ;;  %403 = vst.msk [vmem:[#allocation2 + $0x8] sm:$0xff] %vm401_vm0, %v386_v2  ;;  %v419_v6 = vmul.f32 %v386_v2, %v386_v2  ;;  %v387_v9 = vld [vmem:[%s4562_s10 + $0x10] sm:$0xff]  ;;  %vm4266_vm2 = vmmov 0   ;;  %vm2873_vm3 = vcmask 125952  }
  0xb5   : > { %v393_v3 = vld [vmem:[%s4569_s11] sm:$0xff]  ;;  %402 = vst.msk [vmem:[#allocation2] sm:$0xff] %vm401_vm0, %v385_v1  ;;  %v418_v5 = vmul.f32 %v385_v1, %v385_v1  ;;  %v388_v10 = vld [vmem:[%s4562_s10 + $0x18] sm:$0xff]  ;;  %3368 = vmatpush3.bf16.msra.mxu0 %v4583_v0  ;;  %v435_v11 = vmul.f32 %v394_v4, %v394_v4  ;;  %v451_v12 = vmul.f32 %v394_v4, %v386_v2  ;;  %411 = vst.msk [vmem:[#allocation2 + $0x48] sm:$0xff] %vm401_vm0, %v394_v4  ;;  %s3033_s15 = sshll.u32 %s4558_s4, 2  ;;  %s3167_s0 = sshll.u32 %s4329_s28, 6 }
  0xb6   : > { %v434_v7 = vmul.f32 %v393_v3, %v393_v3  ;;  %v450_v8 = vmul.f32 %v393_v3, %v385_v1  ;;  %410 = vst.msk [vmem:[#allocation2 + $0x40] sm:$0xff] %vm401_vm0, %v393_v3  ;;  %404 = vst.msk [vmem:[#allocation2 + $0x10] sm:$0xff] %vm401_vm0, %v387_v9  ;;  %v389_v13 = vld [vmem:[%s4562_s10 + $0x20] sm:$0xff]  ;;  %v390_v14 = vld [vmem:[%s4562_s10 + $0x28] sm:$0xff]  ;;  %v420_v16 = vmul.f32 %v387_v9, %v387_v9  ;;  %3409 = vmatprep.subr.bf16.mxu0 %v4583_v0  ;;  %s381_s14 = scalar_lea.vmem [#allocation12], %s3033_s15  ;;  %s5324_s17 = scalar_lea.hbm %s5373_s7, %s3167_s0 }
  0xb7   : > { %405 = vst.msk [vmem:[#allocation2 + $0x18] sm:$0xff] %vm401_vm0, %v388_v10  ;;  %v391_v15 = vld [vmem:[%s4562_s10 + $0x30] sm:$0xff]  ;;  %v421_v17 = vmul.f32 %v388_v10, %v388_v10  ;;  %426 = vst.msk [vmem:[#allocation2 + $0x80] sm:$0xff] %vm401_vm0, %v418_v5  ;;  %v392_v18 = vld [vmem:[%s4562_s10 + $0x38] sm:$0xff]  ;;  %v422_v21 = vmul.f32 %v389_v13, %v389_v13  ;;  %v423_v22 = vmul.f32 %v390_v14, %v390_v14  ;;  %s2892_s29 = sshll.u32 %s381_s14, 4  ;;  %s2879_s23 = scalar_lea.sflag [#allocation5], %s4558_s4  ;;  %s5319_s29 = int_to_ptr.vmem [resolvable:$true] %s2892_s29 }
  0xb8   : > { %427 = vst.msk [vmem:[#allocation2 + $0x88] sm:$0xff] %vm401_vm0, %v419_v6  ;;  %442 = vst.msk [vmem:[#allocation2 + $0xc0] sm:$0xff] %vm401_vm0, %v434_v7  ;;  %v395_v19 = vld [vmem:[%s4569_s11 + $0x10] sm:$0xff]  ;;  %v396_v20 = vld [vmem:[%s4569_s11 + $0x18] sm:$0xff]  ;;  %v424_v23 = vmul.f32 %v391_v15, %v391_v15  ;;  %v425_v27 = vmul.f32 %v392_v18, %v392_v18  ;;  %s4176_s21 = scalar_lea.vmem %s5319_s29, 64  ;;  %s4267_s10 = smov [#allocation12]  }
  0xb9   : > { %458 = vst.msk [vmem:[#allocation2 + $0x100] sm:$0xff] %vm401_vm0, %v450_v8  ;;  %406 = vst.msk [vmem:[#allocation2 + $0x20] sm:$0xff] %vm401_vm0, %v389_v13  ;;  %v397_v24 = vld [vmem:[%s4569_s11 + $0x20] sm:$0xff]  ;;  %v398_v25 = vld [vmem:[%s4569_s11 + $0x28] sm:$0xff]  ;;  %v436_v28 = vmul.f32 %v395_v19, %v395_v19  ;;  %v437_v29 = vmul.f32 %v396_v20, %v396_v20  ;;  %v452_v30 = vmul.f32 %v395_v19, %v387_v9  ;;  %p4177_p2 = scmp.ne.s32.totalorder %s5319_s29, %s4176_s21  ;;  %s4180_s28 = sshll.u32 %s4267_s10, 4  ;;  %s4181_s28 = int_to_ptr.vmem [resolvable:$false] %s4180_s28 }
  0xba   : > { %407 = vst.msk [vmem:[#allocation2 + $0x28] sm:$0xff] %vm401_vm0, %v390_v14  ;;  %408 = vst.msk [vmem:[#allocation2 + $0x30] sm:$0xff] %vm401_vm0, %v391_v15  ;;  %v399_v26 = vld [vmem:[%s4569_s11 + $0x30] sm:$0xff]  ;;  %v400_v31 = vld [vmem:[%s4569_s11 + $0x38] sm:$0xff]  ;;  %v438_v32 = vmul.f32 %v397_v24, %v397_v24  ;;  %v439_v33 = vmul.f32 %v398_v25, %v398_v25  ;;  %v453_v35 = vmul.f32 %v396_v20, %v388_v10  ;;  %s4182_s2 = scalar_lea.vmem %s4181_s28, 128  ;;  %p4183_p8 = scmp.lt.s32.totalorder %s5319_s29, %s4181_s28 }
  0xbb   : > { %443 = vst.msk [vmem:[#allocation2 + $0xc8] sm:$0xff] %vm401_vm0, %v435_v11  ;;  %459 = vst.msk [vmem:[#allocation2 + $0x108] sm:$0xff] %vm401_vm0, %v451_v12  ;;  %v440_v34 = vmul.f32 %v399_v26, %v399_v26  ;;  %v441_v36 = vmul.f32 %v400_v31, %v400_v31  ;;  %v454_v37 = vmul.f32 %v397_v24, %v389_v13  ;;  %v467_v42 = vld [vmem:[#allocation2 + $0x8] sm:$0xff]  ;;  %p4178_p4 = pnand %p4177_p2, %p4462_p5  ;;  %p4184_p6 = scmp.lt.s32.totalorder %s4182_s2, %s4176_s21 }
  0xbc   : > { %409 = vst.msk [vmem:[#allocation2 + $0x38] sm:$0xff] %vm401_vm0, %v392_v18  ;;  %412 = vst.msk [vmem:[#allocation2 + $0x50] sm:$0xff] %vm401_vm0, %v395_v19  ;;  %v455_v38 = vmul.f32 %v398_v25, %v390_v14  ;;  %v456_v39 = vmul.f32 %v399_v26, %v391_v15  ;;  %v457_v40 = vmul.f32 %v400_v31, %v392_v18  ;;  %v466_v41 = vld [vmem:[#allocation2] sm:$0xff]  ;;  %v475_v47 = vld [vmem:[#allocation2 + $0x48] sm:$0xff] }
  0xbd   : > { %413 = vst.msk [vmem:[#allocation2 + $0x58] sm:$0xff] %vm401_vm0, %v396_v20  ;;  %428 = vst.msk [vmem:[#allocation2 + $0x90] sm:$0xff] %vm401_vm0, %v420_v16  ;;  %v474_v43 = vld [vmem:[#allocation2 + $0x40] sm:$0xff]  ;;  %v4643_v44 = vpack.c.bf16 %v467_v42, %v466_v41  ;;  %v468_v45 = vld [vmem:[#allocation2 + $0x10] sm:$0xff]  ;;  %p4179_p0 = pneg %p4178_p4  ;;  %p4185_p10 = por %p4184_p6, %p4183_p8 }
  0xbe   : > { %429 = vst.msk [vmem:[#allocation2 + $0x98] sm:$0xff] %vm401_vm0, %v421_v17  ;;  %414 = vst.msk [vmem:[#allocation2 + $0x60] sm:$0xff] %vm401_vm0, %v397_v24  ;;  %v469_v46 = vld [vmem:[#allocation2 + $0x18] sm:$0xff]  ;;  %v4648_v52 = vpack.c.bf16 %v475_v47, %v474_v43 }
  0xbf   : > { %415 = vst.msk [vmem:[#allocation2 + $0x68] sm:$0xff] %vm401_vm0, %v398_v25  ;;  %416 = vst.msk [vmem:[#allocation2 + $0x70] sm:$0xff] %vm401_vm0, %v399_v26  ;;  %v4646_v48 = vpack.c.bf16 %v469_v46, %v468_v45  ;;  %v526_v53 = vunpack.c.l.bf16 %v4643_v44  ;;  %v527_v54 = vunpack.c.h.bf16 %v4643_v44  ;;  %p4186_p3 = pnand %p4185_p10, %p4179_p0 }
  0xc0   : > { %430 = vst.msk [vmem:[#allocation2 + $0xa0] sm:$0xff] %vm401_vm0, %v422_v21  ;;  %431 = vst.msk [vmem:[#allocation2 + $0xa8] sm:$0xff] %vm401_vm0, %v423_v22  ;;  %v470_v49 = vld [vmem:[#allocation2 + $0x20] sm:$0xff]  ;;  %v534_v60 = vunpack.c.l.bf16 %v4648_v52  ;;  %v535_v9 = vunpack.c.h.bf16 %v4648_v52 }
  0xc1   : > { %432 = vst.msk [vmem:[#allocation2 + $0xb0] sm:$0xff] %vm401_vm0, %v424_v23  ;;  %417 = vst.msk [vmem:[#allocation2 + $0x78] sm:$0xff] %vm401_vm0, %v400_v31  ;;  %v471_v50 = vld [vmem:[#allocation2 + $0x28] sm:$0xff]  ;;  %v472_v51 = vld [vmem:[#allocation2 + $0x30] sm:$0xff]  ;;  %v528_v57 = vunpack.c.l.bf16 %v4646_v48  ;;  %v529_v58 = vunpack.c.h.bf16 %v4646_v48  ;;  %v566_v61 = vsub.f32 %v466_v41, %v526_v53  ;;  %v567_v62 = vsub.f32 %v467_v42, %v527_v54 }
  0xc2   : > { %433 = vst.msk [vmem:[#allocation2 + $0xb8] sm:$0xff] %vm401_vm0, %v425_v27  ;;  %444 = vst.msk [vmem:[#allocation2 + $0xd0] sm:$0xff] %vm401_vm0, %v436_v28  ;;  %v4652_v55 = vpack.c.bf16 %v471_v50, %v470_v49  ;;  %v574_v19 = vsub.f32 %v474_v43, %v534_v60  ;;  %v575_v20 = vsub.f32 %v475_v47, %v535_v9  ;;  %v482_v27 = vld [vmem:[#allocation2 + $0x80] sm:$0xff]  ;;  %v483_v31 = vld [vmem:[#allocation2 + $0x88] sm:$0xff] }
  0xc3   : > { %445 = vst.msk [vmem:[#allocation2 + $0xd8] sm:$0xff] %vm401_vm0, %v437_v29  ;;  %460 = vst.msk [vmem:[#allocation2 + $0x110] sm:$0xff] %vm401_vm0, %v452_v30  ;;  %v473_v56 = vld [vmem:[#allocation2 + $0x38] sm:$0xff]  ;;  %v568_v2 = vsub.f32 %v468_v45, %v528_v57  ;;  %v569_v3 = vsub.f32 %v469_v46, %v529_v58  ;;  %v606_v6 = vpack.c.bf16 %v567_v62, %v566_v61  ;;  %v476_v10 = vld [vmem:[#allocation2 + $0x50] sm:$0xff] }
  0xc4   : > { %446 = vst.msk [vmem:[#allocation2 + $0xe0] sm:$0xff] %vm401_vm0, %v438_v32  ;;  %447 = vst.msk [vmem:[#allocation2 + $0xe8] sm:$0xff] %vm401_vm0, %v439_v33  ;;  %v4656_v59 = vpack.c.bf16 %v473_v56, %v472_v51  ;;  %v530_v63 = vunpack.c.l.bf16 %v4652_v55  ;;  %v531_v1 = vunpack.c.h.bf16 %v4652_v55  ;;  %v477_v11 = vld [vmem:[#allocation2 + $0x58] sm:$0xff]  ;;  %v610_v28 = vpack.c.bf16 %v575_v20, %v574_v19  ;;  %v484_v45 = vld [vmem:[#allocation2 + $0x90] sm:$0xff] }
  0xc5   : > { %448 = vst.msk [vmem:[#allocation2 + $0xf0] sm:$0xff] %vm401_vm0, %v440_v34  ;;  %461 = vst.msk [vmem:[#allocation2 + $0x118] sm:$0xff] %vm401_vm0, %v453_v35  ;;  %v607_v12 = vpack.c.bf16 %v569_v3, %v568_v2  ;;  %v478_v13 = vld [vmem:[#allocation2 + $0x60] sm:$0xff]  ;;  %3369 = vmatprep.mubr.msk.bf16.mxu0 %vm401_vm0, %v606_v6  ;;  %v4666_v18 = vpack.c.bf16 %v477_v11, %v476_v10  ;;  %v485_v46 = vld [vmem:[#allocation2 + $0x98] sm:$0xff] }
  0xc6   : > { %449 = vst.msk [vmem:[#allocation2 + $0xf8] sm:$0xff] %vm401_vm0, %v441_v36  ;;  %462 = vst.msk [vmem:[#allocation2 + $0x120] sm:$0xff] %vm401_vm0, %v454_v37  ;;  %v532_v4 = vunpack.c.l.bf16 %v4656_v59  ;;  %v533_v5 = vunpack.c.h.bf16 %v4656_v59  ;;  %v570_v7 = vsub.f32 %v470_v49, %v530_v63  ;;  %v571_v8 = vsub.f32 %v471_v50, %v531_v1  ;;  %v479_v14 = vld [vmem:[#allocation2 + $0x68] sm:$0xff]  ;;  %v480_v22 = vld [vmem:[#allocation2 + $0x70] sm:$0xff] }
  0xc7   : > { %463 = vst.msk [vmem:[#allocation2 + $0x128] sm:$0xff] %vm401_vm0, %v455_v38  ;;  %464 = vst.msk [vmem:[#allocation2 + $0x130] sm:$0xff] %vm401_vm0, %v456_v39  ;;  %3370 = vmatmul.mubr.msk.bf16.vlgmr.msra.gmra.mrb[0].mxu0 %vm401_vm0, %v607_v12  ;;  %v4669_v21 = vpack.c.bf16 %v479_v14, %v478_v13  ;;  %v536_v25 = vunpack.c.l.bf16 %v4666_v18  ;;  %v537_v26 = vunpack.c.h.bf16 %v4666_v18  ;;  %v4685_v37 = vpack.c.bf16 %v483_v31, %v482_v27  ;;  %v486_v47 = vld [vmem:[#allocation2 + $0xa0] sm:$0xff]  ;;  %v487_v49 = vld [vmem:[#allocation2 + $0xa8] sm:$0xff] }
  0xc8   : > { %465 = vst.msk [vmem:[#allocation2 + $0x138] sm:$0xff] %vm401_vm0, %v457_v40  ;;  %v608_v15 = vpack.c.bf16 %v571_v8, %v570_v7  ;;  %v572_v16 = vsub.f32 %v472_v51, %v532_v4  ;;  %v573_v17 = vsub.f32 %v473_v56, %v533_v5  ;;  %3410 = vmatpush3.bf16.msra.mxu0 %v4583_v0  ;;  %v481_v23 = vld [vmem:[#allocation2 + $0x78] sm:$0xff]  ;;  %v4682_v0 = vld [vmem:[%s5369_s3] sm:$0xff]   ;;  %v488_v2 = vld [vmem:[#allocation2 + $0xb0] sm:$0xff] }
  0xc9   : > { %v538_v29 = vunpack.c.l.bf16 %v4669_v21  ;;  %v539_v30 = vunpack.c.h.bf16 %v4669_v21  ;;  %v576_v32 = vsub.f32 %v476_v10, %v536_v25  ;;  %v577_v33 = vsub.f32 %v477_v11, %v537_v26  ;;  %3451 = vmatprep.subr.bf16.mxu0 %v4682_v0  ;;  %v489_v3 = vld [vmem:[#allocation2 + $0xb8] sm:$0xff]  ;;  %v490_v4 = vld [vmem:[#allocation2 + $0xc0] sm:$0xff]  ;;  %v491_v5 = vld [vmem:[#allocation2 + $0xc8] sm:$0xff] }
  0xca   : > { %3373 = vmatprep.mubr.msk.bf16.mxu0 %vm401_vm0, %v608_v15  ;;  %v609_v24 = vpack.c.bf16 %v573_v17, %v572_v16  ;;  %v4677_v34 = vpack.c.bf16 %v481_v23, %v480_v22  ;;  %v542_v42 = vunpack.c.l.bf16 %v4685_v37  ;;  %v543_v43 = vunpack.c.h.bf16 %v4685_v37  ;;  %v492_v19 = vld [vmem:[#allocation2 + $0xd0] sm:$0xff]  ;;  %v493_v20 = vld [vmem:[#allocation2 + $0xd8] sm:$0xff] }
  0xcb   : > { %v578_v35 = vsub.f32 %v478_v13, %v538_v29  ;;  %v579_v36 = vsub.f32 %v479_v14, %v539_v30  ;;  %v611_v38 = vpack.c.bf16 %v577_v33, %v576_v32  ;;  %v4693_v53 = vpack.c.bf16 %v485_v46, %v484_v45 }
  0xcc   : > { %v540_v39 = vunpack.c.l.bf16 %v4677_v34  ;;  %v541_v40 = vunpack.c.h.bf16 %v4677_v34  ;;  %v582_v54 = vsub.f32 %v482_v27, %v542_v42  ;;  %v583_v56 = vsub.f32 %v483_v31, %v543_v43 }
  0xcd   : > { %v612_v41 = vpack.c.bf16 %v579_v36, %v578_v35  ;;  %v4696_v57 = vpack.c.bf16 %v487_v49, %v486_v47  ;;  %v544_v60 = vunpack.c.l.bf16 %v4693_v53  ;;  %v545_v61 = vunpack.c.h.bf16 %v4693_v53 }
  0xce   : > { %v580_v50 = vsub.f32 %v480_v22, %v540_v39  ;;  %v581_v51 = vsub.f32 %v481_v23, %v541_v40  ;;  %v614_v62 = vpack.c.bf16 %v583_v56, %v582_v54  ;;  %v4703_v8 = vpack.c.bf16 %v489_v3, %v488_v2  ;;  %v494_v22 = vld [vmem:[#allocation2 + $0xe0] sm:$0xff]  ;;  %v495_v23 = vld [vmem:[#allocation2 + $0xe8] sm:$0xff]  ;;  %v497_v39 = vld [vmem:[#allocation2 + $0xf8] sm:$0xff] }
  0xcf   : > { %3374 = vmatmul.mubr.msk.bf16.gmra.mrb[4].mxu0 %vm401_vm0, %v609_v24  ;;  %v546_v63 = vunpack.c.l.bf16 %v4696_v57  ;;  %v547_v1 = vunpack.c.h.bf16 %v4696_v57  ;;  %v584_v6 = vsub.f32 %v484_v45, %v544_v60  ;;  %v585_v7 = vsub.f32 %v485_v46, %v545_v61  ;;  %v498_v40 = vld [vmem:[#allocation2 + $0x100] sm:$0xff]  ;;  %v500_v61 = vld [vmem:[#allocation2 + $0x110] sm:$0xff] }
  0xd0   : > { %3377 = vmatprep.mubr.msk.bf16.mxu0 %vm401_vm0, %v610_v28  ;;  %v613_v58 = vpack.c.bf16 %v581_v51, %v580_v50  ;;  %v4706_v11 = vpack.c.bf16 %v491_v5, %v490_v4  ;;  %v548_v13 = vunpack.c.l.bf16 %v4703_v8  ;;  %v549_v14 = vunpack.c.h.bf16 %v4703_v8 }
  0xd1   : > { %v586_v9 = vsub.f32 %v486_v47, %v546_v63  ;;  %v587_v10 = vsub.f32 %v487_v49, %v547_v1  ;;  %v615_v12 = vpack.c.bf16 %v585_v7, %v584_v6  ;;  %v4713_v26 = vpack.c.bf16 %v493_v20, %v492_v19  ;;  %v502_v63 = vld [vmem:[#allocation2 + $0x120] sm:$0xff]  ;;  %v503_v1 = vld [vmem:[#allocation2 + $0x128] sm:$0xff] }
  0xd2   : > { %v550_v16 = vunpack.c.l.bf16 %v4706_v11  ;;  %v551_v17 = vunpack.c.h.bf16 %v4706_v11  ;;  %v588_v24 = vsub.f32 %v488_v2, %v548_v13  ;;  %v589_v25 = vsub.f32 %v489_v3, %v549_v14 }
  0xd3   : > { %v616_v15 = vpack.c.bf16 %v587_v10, %v586_v9  ;;  %v4716_v29 = vpack.c.bf16 %v495_v23, %v494_v22  ;;  %v552_v31 = vunpack.c.l.bf16 %v4713_v26  ;;  %v553_v32 = vunpack.c.h.bf16 %v4713_v26 }
  0xd4   : > { %v590_v27 = vsub.f32 %v490_v4, %v550_v16  ;;  %v591_v28 = vsub.f32 %v491_v5, %v551_v17  ;;  %v617_v30 = vpack.c.bf16 %v589_v25, %v588_v24  ;;  %v4736_v7 = vpack.c.bf16 %v503_v1, %v502_v63  ;;  %v504_v16 = vld [vmem:[#allocation2 + $0x130] sm:$0xff]  ;;  %v505_v17 = vld [vmem:[#allocation2 + $0x138] sm:$0xff] }
  0xd5   : > { %v554_v35 = vunpack.c.l.bf16 %v4716_v29  ;;  %v555_v36 = vunpack.c.h.bf16 %v4716_v29  ;;  %v592_v42 = vsub.f32 %v492_v19, %v552_v31  ;;  %v593_v43 = vsub.f32 %v493_v20, %v553_v32 }
  0xd6   : > { %v618_v33 = vpack.c.bf16 %v591_v28, %v590_v27  ;;  %v562_v14 = vunpack.c.l.bf16 %v4736_v7 }
  0xd7   : > { %3378 = vmatmul.mubr.msk.bf16.gmra.mrb[8].mxu0 %vm401_vm0, %v611_v38  ;;  %v496_v38 = vld [vmem:[#allocation2 + $0xf0] sm:$0xff]  ;;  %v594_v46 = vsub.f32 %v494_v22, %v554_v35  ;;  %v595_v47 = vsub.f32 %v495_v23, %v555_v36  ;;  %v619_v50 = vpack.c.bf16 %v593_v43, %v592_v42  ;;  %v525_v22 = vpack.c.bf16 %v505_v17, %v504_v16 }
  0xd8   : > { %3381 = vmatprep.mubr.msk.bf16.mxu0 %vm401_vm0, %v612_v41  ;;  %v499_v41 = vld [vmem:[#allocation2 + $0x108] sm:$0xff]  ;;  %v4723_v45 = vpack.c.bf16 %v497_v39, %v496_v38  ;;  %v602_v23 = vsub.f32 %v502_v63, %v562_v14  ;;  %v4849_v63 = vld [vmem:[#allocation11 + $0x8] sm:$0xff]  }
  0xd9   : > { %v4726_v49 = vpack.c.bf16 %v499_v41, %v498_v40  ;;  %v620_v56 = vpack.c.bf16 %v595_v47, %v594_v46  ;;  %v564_v27 = vunpack.c.l.bf16 %v525_v22  ;;  %v565_v28 = vunpack.c.h.bf16 %v525_v22 }
  0xda   : > { %v556_v51 = vunpack.c.l.bf16 %v4723_v45  ;;  %v557_v54 = vunpack.c.h.bf16 %v4723_v45 }
  0xdb   : > { %v559_v60 = vunpack.c.h.bf16 %v4726_v49  ;;  %v604_v31 = vsub.f32 %v504_v16, %v564_v27  ;;  %v605_v32 = vsub.f32 %v505_v17, %v565_v28 }
  0xdc   : > { %v596_v2 = vsub.f32 %v496_v38, %v556_v51  ;;  %v597_v3 = vsub.f32 %v497_v39, %v557_v54 }
  0xdd   : > { %v599_v6 = vsub.f32 %v499_v41, %v559_v60 }
  0xde   : > { %v621_v9 = vpack.c.bf16 %v597_v3, %v596_v2  ;;  %v4854_v3 = vld [vmem:[#allocation11 + $0x10] sm:$0xff]  }
  0xdf   : > { %3382 = vmatmul.mubr.msk.bf16.gmra.mrb[12].mxu0 %vm401_vm0, %v613_v58  ;;  %v558_v58 = vunpack.c.l.bf16 %v4726_v49 }
  0xe0   : > { %3385 = vmatprep.mubr.msk.bf16.mxu0 %vm401_vm0, %v614_v62  ;;  %v501_v62 = vld [vmem:[#allocation2 + $0x118] sm:$0xff] }
  0xe1   : > { %v4733_v4 = vpack.c.bf16 %v501_v62, %v500_v61  ;;  %v598_v5 = vsub.f32 %v498_v40, %v558_v58 }
  0xe3   : > { %v560_v10 = vunpack.c.l.bf16 %v4733_v4  ;;  %v622_v13 = vpack.c.bf16 %v599_v6, %v598_v5 }
  0xe5   : > { %v600_v19 = vsub.f32 %v500_v61, %v560_v10 }
  0xe7   : > { %3386 = vmatmul.mubr.msk.bf16.gmra.mrb[16].mxu0 %vm401_vm0, %v615_v12  ;;  %v561_v12 = vunpack.c.h.bf16 %v4733_v4 }
  0xe8   : > { %3389 = vmatprep.mubr.msk.bf16.mxu0 %vm401_vm0, %v616_v15  ;;  %v563_v15 = vunpack.c.h.bf16 %v4736_v7 }
  0xe9   : > { %v601_v20 = vsub.f32 %v501_v62, %v561_v12 }
  0xea   : > { %v603_v24 = vsub.f32 %v503_v1, %v563_v15 }
  0xeb   : > { %v623_v25 = vpack.c.bf16 %v601_v20, %v600_v19 }
  0xef   : > { %3390 = vmatmul.mubr.msk.bf16.gmra.mrb[20].mxu0 %vm401_vm0, %v617_v30  ;;  %v624_v30 = vpack.c.bf16 %v603_v24, %v602_v23 }
  0xf0   : > { %3393 = vmatprep.mubr.msk.bf16.mxu0 %vm401_vm0, %v618_v33  ;;  %v625_v33 = vpack.c.bf16 %v605_v32, %v604_v31 }
  0xf7   : > { %3394 = vmatmul.mubr.msk.bf16.gmra.mrb[24].mxu0 %vm401_vm0, %v619_v50 }
  0xf8   : > { %3397 = vmatprep.mubr.msk.bf16.mxu0 %vm401_vm0, %v620_v56 }
  0xff   : > { %3398 = vmatmul.mubr.msk.bf16.gmra.mrb[28].mxu0 %vm401_vm0, %v621_v9 }
 0x100   : > { %3401 = vmatprep.mubr.msk.bf16.mxu0 %vm401_vm0, %v622_v13 }
 0x107   : > { %3402 = vmatmul.mubr.msk.bf16.gmra.mrb[32].mxu0 %vm401_vm0, %v623_v25  ;;  %v4876_v25 = vld [vmem:[#allocation9] sm:$0xff]  }
 0x108   : > { %3405 = vmatprep.mubr.msk.bf16.mxu0 %vm401_vm0, %v624_v30 }
 0x10f   : > { %3406 = vmatmul.mubr.msk.bf16.gmra.mrb[36].mxu0 %vm401_vm0, %v625_v33 }
 0x110   : > { %3411 = vmatprep.mubr.msk.bf16.mxu0 %vm401_vm0, %v4643_v44 }
 0x117   : > { %3412 = vmatmul.mubr.msk.bf16.vlgmr.msra.gmra.mrb[0].mxu0 %vm401_vm0, %v4646_v48 }
 0x118   : > { %3415 = vmatprep.mubr.msk.bf16.mxu0 %vm401_vm0, %v4652_v55  ;;  %3452 = vmatpush3.bf16.msra.mxu0 %v4682_v0 }
 0x11f   : > { %3416 = vmatmul.mubr.msk.bf16.gmra.mrb[4].mxu0 %vm401_vm0, %v4656_v59 }
 0x120   : > { %3419 = vmatprep.mubr.msk.bf16.mxu0 %vm401_vm0, %v4648_v52 }
 0x127   : > { %3420 = vmatmul.mubr.msk.bf16.gmra.mrb[8].mxu0 %vm401_vm0, %v4666_v18 }
 0x128   : > { %3423 = vmatprep.mubr.msk.bf16.mxu0 %vm401_vm0, %v4669_v21 }
 0x12f   : > { %3424 = vmatmul.mubr.msk.bf16.gmra.mrb[12].mxu0 %vm401_vm0, %v4677_v34 }
 0x130   : > { %3427 = vmatprep.mubr.msk.bf16.mxu0 %vm401_vm0, %v4685_v37 }
 0x137   : > { %3428 = vmatmul.mubr.msk.bf16.gmra.mrb[16].mxu0 %vm401_vm0, %v4693_v53 }
 0x138   : > { %3431 = vmatprep.mubr.msk.bf16.mxu0 %vm401_vm0, %v4696_v57 }
 0x13f   : > { %3432 = vmatmul.mubr.msk.bf16.gmra.mrb[20].mxu0 %vm401_vm0, %v4703_v8 }
 0x140   : > { %3435 = vmatprep.mubr.msk.bf16.mxu0 %vm401_vm0, %v4706_v11 }
 0x147   : > { %3436 = vmatmul.mubr.msk.bf16.gmra.mrb[24].mxu0 %vm401_vm0, %v4713_v26 }
 0x148   : > { %3439 = vmatprep.mubr.msk.bf16.mxu0 %vm401_vm0, %v4716_v29 }
 0x14f   : > { %3440 = vmatmul.mubr.msk.bf16.gmra.mrb[28].mxu0 %vm401_vm0, %v4723_v45 }
 0x150   : > { %3443 = vmatprep.mubr.msk.bf16.mxu0 %vm401_vm0, %v4726_v49 }
 0x157   : > { %3444 = vmatmul.mubr.msk.bf16.gmra.mrb[32].mxu0 %vm401_vm0, %v4733_v4 }
 0x158   : > { %3447 = vmatprep.mubr.msk.bf16.mxu0 %vm401_vm0, %v4736_v7 }
 0x15f   : > { %3448 = vmatmul.mubr.msk.bf16.gmra.mrb[36].mxu0 %vm401_vm0, %v525_v22 }
 0x160   : > { %3453 = vmatprep.mubr.msk.bf16.mxu0 %vm401_vm0, %v4643_v44  ;;  %v4826_v44 = vld [vmem:[#allocation11] sm:$0xff]  }
 0x161   : > { %3501 = vmatprep.mubr.msk.bf16.mxu1 %vm1441_vm1, %v4826_v44 }
 0x167   : > { %3454 = vmatmul.mubr.msk.bf16.vlgmr.msra.gmra.mrb[0].mxu0 %vm401_vm0, %v4646_v48 }
 0x168   : > { %3457 = vmatprep.mubr.msk.bf16.mxu0 %vm401_vm0, %v4652_v55 }
 0x16f   : > { %3458 = vmatmul.mubr.msk.bf16.gmra.mrb[4].mxu0 %vm401_vm0, %v4656_v59 }
 0x170   : > { %3461 = vmatprep.mubr.msk.bf16.mxu0 %vm401_vm0, %v4648_v52 }
 0x177   : > { %3462 = vmatmul.mubr.msk.bf16.gmra.mrb[8].mxu0 %vm401_vm0, %v4666_v18 }
 0x178   : > { %3465 = vmatprep.mubr.msk.bf16.mxu0 %vm401_vm0, %v4669_v21 }
 0x17f   : > { %3466 = vmatmul.mubr.msk.bf16.gmra.mrb[12].mxu0 %vm401_vm0, %v4677_v34 }
 0x180   : > { %3469 = vmatprep.mubr.msk.bf16.mxu0 %vm401_vm0, %v4685_v37 }
 0x187   : > { %3470 = vmatmul.mubr.msk.bf16.gmra.mrb[16].mxu0 %vm401_vm0, %v4693_v53 }
 0x188   : > { %3473 = vmatprep.mubr.msk.bf16.mxu0 %vm401_vm0, %v4696_v57 }
 0x18f   : > { %3474 = vmatmul.mubr.msk.bf16.gmra.mrb[20].mxu0 %vm401_vm0, %v4703_v8 }
 0x190   : > { %3477 = vmatprep.mubr.msk.bf16.mxu0 %vm401_vm0, %v4706_v11 }
 0x197   : > { %3478 = vmatmul.mubr.msk.bf16.gmra.mrb[24].mxu0 %vm401_vm0, %v4713_v26 }
 0x198   : > { %3481 = vmatprep.mubr.msk.bf16.mxu0 %vm401_vm0, %v4716_v29 }
 0x19f   : > { %3482 = vmatmul.mubr.msk.bf16.gmra.mrb[28].mxu0 %vm401_vm0, %v4723_v45 }
 0x1a0   : > { %3485 = vmatprep.mubr.msk.bf16.mxu0 %vm401_vm0, %v4726_v49 }
 0x1a7   : > { %3486 = vmatmul.mubr.msk.bf16.gmra.mrb[32].mxu0 %vm401_vm0, %v4733_v4 }
 0x1a8   : > { %3489 = vmatprep.mubr.msk.bf16.mxu0 %vm401_vm0, %v4736_v7 }
 0x1af   : > { %3490 = vmatmul.mubr.msk.bf16.gmra.mrb[36].mxu0 %vm401_vm0, %v525_v22  ;;  %v4871_v22 = vld [vmem:[#allocation11 + $0x18] sm:$0xff]  }
 0x23a   : > { %v3455_v48 = vpop.f32.mrb[0].mxu0 }
 0x23b   : > { %v1182_v52 = vpop.f32.mrb[1].mxu0 }
 0x23c   : > { %v3456_v55 = vpop.f32.mrb[2].mxu0 }
 0x23d   : > { %v4830_v59 = vpack.c.bf16 %v3456_v55, %v3455_v48  ;;  %v1185_v18 = vpop.f32.mrb[3].mxu0 }
 0x23e   : > { %v1397_v21 = vpack.c.bf16 %v1185_v18, %v1182_v52 }
 0x23f   : > { %v1403_v34 = vunpack.c.l.bf16 %v4830_v59  ;;  %v1404_v0 = vunpack.c.h.bf16 %v4830_v59 }
 0x240   : > { %v1401_v37 = vunpack.c.l.bf16 %v1397_v21  ;;  %v1402_v53 = vunpack.c.h.bf16 %v1397_v21  ;;  %3493 = vmatprep.subr.bf16.mxu1 %v1397_v21 }
 0x241   : > { %v1411_v57 = vsub.f32 %v3455_v48, %v1403_v34  ;;  %v1412_v8 = vsub.f32 %v3456_v55, %v1404_v0  ;;  %3494 = vmatpush3.bf16.msra.mxu1 %v1397_v21 }
 0x242   : > { %v1409_v11 = vsub.f32 %v1182_v52, %v1401_v37  ;;  %v1410_v26 = vsub.f32 %v1185_v18, %v1402_v53  ;;  %v3459_v29 = vpop.f32.mrb[4].mxu0  ;;  %3495 = vmatprep.subr.bf16.mxu1 %v4830_v59  ;;  %v4893_v37 = vld [vmem:[#allocation9 + $0x8] sm:$0xff]  }
 0x243   : > { %v4835_v35 = vpack.c.bf16 %v1412_v8, %v1411_v57  ;;  %v1198_v36 = vpop.f32.mrb[5].mxu0  ;;  %v4898_v8 = vld [vmem:[#allocation9 + $0x10] sm:$0xff]  }
 0x244   : > { %v4837_v38 = vpack.c.bf16 %v1410_v26, %v1409_v11  ;;  %v3460_v39 = vpop.f32.mrb[6].mxu0 }
 0x245   : > { %v4839_v40 = vpack.c.bf16 %v3460_v39, %v3459_v29  ;;  %v1201_v41 = vpop.f32.mrb[7].mxu0  ;;  %3496 = vmatpush3.bf16.msra.mxu1 %v4830_v59 }
 0x246   : > { %v1399_v42 = vpack.c.bf16 %v1201_v41, %v1198_v36 }
 0x247   : > { %v1407_v43 = vunpack.c.l.bf16 %v4839_v40  ;;  %v1408_v45 = vunpack.c.h.bf16 %v4839_v40 }
 0x248   : > { %v1405_v46 = vunpack.c.l.bf16 %v1399_v42  ;;  %v1406_v47 = vunpack.c.h.bf16 %v1399_v42  ;;  %3497 = vmatprep.subr.bf16.mxu1 %v1399_v42 }
 0x249   : > { %v1415_v49 = vsub.f32 %v3459_v29, %v1407_v43  ;;  %v1416_v50 = vsub.f32 %v3460_v39, %v1408_v45  ;;  %3498 = vmatpush3.bf16.msra.mxu1 %v1399_v42 }
 0x24a   : > { %v1413_v51 = vsub.f32 %v1198_v36, %v1405_v46  ;;  %v1414_v54 = vsub.f32 %v1201_v41, %v1406_v47  ;;  %v3463_v56 = vpop.f32.mrb[8].mxu0  ;;  %3499 = vmatprep.subr.bf16.mxu1 %v4839_v40 }
 0x24b   : > { %v4845_v58 = vpack.c.bf16 %v1416_v50, %v1415_v49  ;;  %v1214_v60 = vpop.f32.mrb[9].mxu0 }
 0x24c   : > { %v4847_v61 = vpack.c.bf16 %v1414_v54, %v1413_v51  ;;  %v3464_v62 = vpop.f32.mrb[10].mxu0  ;;  %v4917_v51 = vld [vmem:[#allocation9 + $0x18] sm:$0xff]  }
 0x24d   : > { %v4851_v1 = vpack.c.bf16 %v3464_v62, %v3463_v56  ;;  %v1217_v2 = vpop.f32.mrb[11].mxu0  ;;  %3500 = vmatpush3.bf16.msra.mxu1 %v4839_v40 }
 0x24e   : > { %v4856_v4 = vpack.c.bf16 %v1217_v2, %v1214_v60  ;;  %3509 = vmatprep.subr.bf16.mxu1 %v1397_v21 }
 0x24f   : > { %v1695_v5 = vunpack.c.l.bf16 %v4851_v1  ;;  %v1696_v6 = vunpack.c.h.bf16 %v4851_v1 }
 0x250   : > { %v1693_v7 = vunpack.c.l.bf16 %v4856_v4  ;;  %v1694_v9 = vunpack.c.h.bf16 %v4856_v4  ;;  %3502 = vmatmul.mubr.msk.bf16.vlgmr.msra.gmra.mrb[0].mxu1 %vm1441_vm1, %v4849_v63 }
 0x251   : > { %v1703_v10 = vsub.f32 %v3463_v56, %v1695_v5  ;;  %v1704_v12 = vsub.f32 %v3464_v62, %v1696_v6  ;;  %3510 = vmatpush3.bf16.msra.mxu1 %v1397_v21  ;;  %3505 = vmatprep.mubr.msk.bf16.mxu1 %vm1441_vm1, %v4854_v3 }
 0x252   : > { %v1701_v13 = vsub.f32 %v1214_v60, %v1693_v7  ;;  %v1702_v14 = vsub.f32 %v1217_v2, %v1694_v9  ;;  %v3467_v15 = vpop.f32.mrb[12].mxu0  ;;  %3511 = vmatprep.subr.bf16.mxu1 %v4830_v59 }
 0x253   : > { %v4867_v16 = vpack.c.bf16 %v1704_v12, %v1703_v10  ;;  %v1230_v17 = vpop.f32.mrb[13].mxu0 }
 0x254   : > { %v4869_v19 = vpack.c.bf16 %v1702_v14, %v1701_v13  ;;  %v3468_v20 = vpop.f32.mrb[14].mxu0 }
 0x255   : > { %v4873_v23 = vpack.c.bf16 %v3468_v20, %v3467_v15  ;;  %v1233_v24 = vpop.f32.mrb[15].mxu0  ;;  %3512 = vmatpush3.bf16.msra.mxu1 %v4830_v59 }
 0x256   : > { %v4878_v27 = vpack.c.bf16 %v1233_v24, %v1230_v17  ;;  %3513 = vmatprep.subr.bf16.mxu1 %v1399_v42 }
 0x257   : > { %v1699_v28 = vunpack.c.l.bf16 %v4873_v23  ;;  %v1700_v30 = vunpack.c.h.bf16 %v4873_v23 }
 0x258   : > { %v1697_v31 = vunpack.c.l.bf16 %v4878_v27  ;;  %v1698_v32 = vunpack.c.h.bf16 %v4878_v27  ;;  %3506 = vmatmul.mubr.msk.bf16.gmra.mrb[4].mxu1 %vm1441_vm1, %v4871_v22 }
 0x259   : > { %v1707_v33 = vsub.f32 %v3467_v15, %v1699_v28  ;;  %v1708_v48 = vsub.f32 %v3468_v20, %v1700_v30  ;;  %3514 = vmatpush3.bf16.msra.mxu1 %v1399_v42  ;;  %3517 = vmatprep.mubr.msk.bf16.mxu1 %vm1441_vm1, %v4876_v25 }
 0x25a   : > { %v1705_v52 = vsub.f32 %v1230_v17, %v1697_v31  ;;  %v1706_v55 = vsub.f32 %v1233_v24, %v1698_v32  ;;  %v3471_v59 = vpop.f32.mrb[16].mxu0  ;;  %3515 = vmatprep.subr.bf16.mxu1 %v4839_v40 }
 0x25b   : > { %v4889_v18 = vpack.c.bf16 %v1708_v48, %v1707_v33  ;;  %v1246_v21 = vpop.f32.mrb[17].mxu0 }
 0x25c   : > { %v4891_v34 = vpack.c.bf16 %v1706_v55, %v1705_v52  ;;  %v3472_v0 = vpop.f32.mrb[18].mxu0 }
 0x25d   : > { %v4895_v53 = vpack.c.bf16 %v3472_v0, %v3471_v59  ;;  %v1249_v57 = vpop.f32.mrb[19].mxu0  ;;  %3516 = vmatpush3.bf16.msra.mxu1 %v4839_v40 }
 0x25e   : > { %v4900_v11 = vpack.c.bf16 %v1249_v57, %v1246_v21  ;;  %3525 = vmatprep.subr.bf16.mxu1 %v4837_v38 }
 0x25f   : > { %v1922_v26 = vunpack.c.l.bf16 %v4895_v53  ;;  %v1923_v29 = vunpack.c.h.bf16 %v4895_v53 }
 0x260   : > { %v1920_v36 = vunpack.c.l.bf16 %v4900_v11  ;;  %v1921_v39 = vunpack.c.h.bf16 %v4900_v11  ;;  %3518 = vmatmul.mubr.msk.bf16.vlgmr.msra.gmra.mrb[0].mxu1 %vm1441_vm1, %v4893_v37 }
 0x261   : > { %v1930_v41 = vsub.f32 %v3471_v59, %v1922_v26  ;;  %v1931_v42 = vsub.f32 %v3472_v0, %v1923_v29  ;;  %3526 = vmatpush3.bf16.msra.mxu1 %v4837_v38  ;;  %3521 = vmatprep.mubr.msk.bf16.mxu1 %vm1441_vm1, %v4898_v8 }
 0x262   : > { %v1928_v40 = vsub.f32 %v1246_v21, %v1920_v36  ;;  %v1929_v43 = vsub.f32 %v1249_v57, %v1921_v39  ;;  %v3475_v45 = vpop.f32.mrb[20].mxu0  ;;  %3527 = vmatprep.subr.bf16.mxu1 %v4835_v35 }
 0x263   : > { %v4913_v46 = vpack.c.bf16 %v1931_v42, %v1930_v41  ;;  %v1262_v47 = vpop.f32.mrb[21].mxu0 }
 0x264   : > { %v4915_v49 = vpack.c.bf16 %v1929_v43, %v1928_v40  ;;  %v3476_v50 = vpop.f32.mrb[22].mxu0 }
 0x265   : > { %v4919_v54 = vpack.c.bf16 %v3476_v50, %v3475_v45  ;;  %v1265_v56 = vpop.f32.mrb[23].mxu0  ;;  %3528 = vmatpush3.bf16.msra.mxu1 %v4835_v35 }
 0x266   : > { %v4922_v38 = vpack.c.bf16 %v1265_v56, %v1262_v47  ;;  %3529 = vmatprep.subr.bf16.mxu1 %v4847_v61 }
 0x267   : > { %v1926_v60 = vunpack.c.l.bf16 %v4919_v54  ;;  %v1927_v62 = vunpack.c.h.bf16 %v4919_v54 }
 0x268   : > { %v1924_v2 = vunpack.c.l.bf16 %v4922_v38  ;;  %v1925_v5 = vunpack.c.h.bf16 %v4922_v38  ;;  %3522 = vmatmul.mubr.msk.bf16.gmra.mrb[4].mxu1 %vm1441_vm1, %v4917_v51 }
 0x269   : > { %v1934_v6 = vsub.f32 %v3475_v45, %v1926_v60  ;;  %v1935_v7 = vsub.f32 %v3476_v50, %v1927_v62  ;;  %3530 = vmatpush3.bf16.msra.mxu1 %v4847_v61  ;;  %3533 = vmatprep.mubr.msk.bf16.mxu1 %vm1441_vm1, %v4876_v25 }
 0x26a   : > { %v1932_v35 = vsub.f32 %v1262_v47, %v1924_v2  ;;  %v1933_v9 = vsub.f32 %v1265_v56, %v1925_v5  ;;  %v3479_v10 = vpop.f32.mrb[24].mxu0  ;;  %3531 = vmatprep.subr.bf16.mxu1 %v4845_v58 }
 0x26b   : > { %v4935_v12 = vpack.c.bf16 %v1935_v7, %v1934_v6  ;;  %v1278_v13 = vpop.f32.mrb[25].mxu0 }
 0x26c   : > { %v4937_v14 = vpack.c.bf16 %v1933_v9, %v1932_v35  ;;  %v3480_v15 = vpop.f32.mrb[26].mxu0 }
 0x26d   : > { %v4939_v17 = vpack.c.bf16 %v3480_v15, %v3479_v10  ;;  %v1281_v20 = vpop.f32.mrb[27].mxu0  ;;  %3532 = vmatpush3.bf16.msra.mxu1 %v4845_v58 }
 0x26e   : > { %v4942_v61 = vpack.c.bf16 %v1281_v20, %v1278_v13  ;;  %3541 = vmatprep.subr.bf16.mxu1 %v4856_v4 }
 0x26f   : > { %v2149_v24 = vunpack.c.l.bf16 %v4939_v17  ;;  %v2150_v28 = vunpack.c.h.bf16 %v4939_v17 }
 0x270   : > { %v2147_v30 = vunpack.c.l.bf16 %v4942_v61  ;;  %v2148_v31 = vunpack.c.h.bf16 %v4942_v61  ;;  %3534 = vmatmul.mubr.msk.bf16.vlgmr.msra.gmra.mrb[0].mxu1 %vm1441_vm1, %v4893_v37 }
 0x271   : > { %v2157_v32 = vsub.f32 %v3479_v10, %v2149_v24  ;;  %v2158_v33 = vsub.f32 %v3480_v15, %v2150_v28  ;;  %3542 = vmatpush3.bf16.msra.mxu1 %v4856_v4  ;;  %3537 = vmatprep.mubr.msk.bf16.mxu1 %vm1441_vm1, %v4898_v8 }
 0x272   : > { %v2155_v58 = vsub.f32 %v1278_v13, %v2147_v30  ;;  %v2156_v48 = vsub.f32 %v1281_v20, %v2148_v31  ;;  %v3483_v52 = vpop.f32.mrb[28].mxu0  ;;  %3543 = vmatprep.subr.bf16.mxu1 %v4851_v1 }
 0x273   : > { %v4955_v55 = vpack.c.bf16 %v2158_v33, %v2157_v32  ;;  %v1294_v59 = vpop.f32.mrb[29].mxu0 }
 0x274   : > { %v4957_v21 = vpack.c.bf16 %v2156_v48, %v2155_v58  ;;  %v3484_v0 = vpop.f32.mrb[30].mxu0 }
 0x275   : > { %v4959_v57 = vpack.c.bf16 %v3484_v0, %v3483_v52  ;;  %v1297_v26 = vpop.f32.mrb[31].mxu0  ;;  %3544 = vmatpush3.bf16.msra.mxu1 %v4851_v1 }
 0x276   : > { %v4962_v29 = vpack.c.bf16 %v1297_v26, %v1294_v59  ;;  %3545 = vmatprep.subr.bf16.mxu1 %v4878_v27 }
 0x277   : > { %v2153_v36 = vunpack.c.l.bf16 %v4959_v57  ;;  %v2154_v39 = vunpack.c.h.bf16 %v4959_v57 }
 0x278   : > { %v2151_v41 = vunpack.c.l.bf16 %v4962_v29  ;;  %v2152_v42 = vunpack.c.h.bf16 %v4962_v29  ;;  %3538 = vmatmul.mubr.msk.bf16.gmra.mrb[4].mxu1 %vm1441_vm1, %v4917_v51 }
 0x279   : > { %v2161_v40 = vsub.f32 %v3483_v52, %v2153_v36  ;;  %v2162_v43 = vsub.f32 %v3484_v0, %v2154_v39  ;;  %3546 = vmatpush3.bf16.msra.mxu1 %v4878_v27  ;;  %3549 = vmatprep.mubr.msk.bf16.mxu1 %vm1441_vm1, %v4826_v44 }
 0x27a   : > { %v2159_v45 = vsub.f32 %v1294_v59, %v2151_v41  ;;  %v2160_v47 = vsub.f32 %v1297_v26, %v2152_v42  ;;  %v3487_v50 = vpop.f32.mrb[32].mxu0  ;;  %3547 = vmatprep.subr.bf16.mxu1 %v4873_v23 }
 0x27b   : > { %v4975_v56 = vpack.c.bf16 %v2162_v43, %v2161_v40  ;;  %v1310_v60 = vpop.f32.mrb[33].mxu0 }
 0x27c   : > { %v4977_v62 = vpack.c.bf16 %v2160_v47, %v2159_v45  ;;  %v3488_v2 = vpop.f32.mrb[34].mxu0 }
 0x27d   : > { %v4979_v5 = vpack.c.bf16 %v3488_v2, %v3487_v50  ;;  %v1313_v6 = vpop.f32.mrb[35].mxu0  ;;  %3548 = vmatpush3.bf16.msra.mxu1 %v4873_v23 }
 0x27e   : > { %v4982_v7 = vpack.c.bf16 %v1313_v6, %v1310_v60  ;;  %3557 = vmatprep.subr.bf16.mxu1 %v4856_v4 }
 0x27f   : > { %v2376_v35 = vunpack.c.l.bf16 %v4979_v5  ;;  %v2377_v9 = vunpack.c.h.bf16 %v4979_v5 }
 0x280   : > { %v2374_v10 = vunpack.c.l.bf16 %v4982_v7  ;;  %v2375_v13 = vunpack.c.h.bf16 %v4982_v7  ;;  %3550 = vmatmul.mubr.msk.bf16.vlgmr.msra.gmra.mrb[8].mxu1 %vm1441_vm1, %v4849_v63 }
 0x281   : > { %v2384_v15 = vsub.f32 %v3487_v50, %v2376_v35  ;;  %v2385_v20 = vsub.f32 %v3488_v2, %v2377_v9  ;;  %3558 = vmatpush3.bf16.msra.mxu1 %v4856_v4  ;;  %3553 = vmatprep.mubr.msk.bf16.mxu1 %vm1441_vm1, %v4854_v3 }
 0x282   : > { %v2382_v24 = vsub.f32 %v1310_v60, %v2374_v10  ;;  %v2383_v28 = vsub.f32 %v1313_v6, %v2375_v13  ;;  %v3491_v30 = vpop.f32.mrb[36].mxu0  ;;  %3559 = vmatprep.subr.bf16.mxu1 %v4851_v1 }
 0x283   : > { %v4995_v31 = vpack.c.bf16 %v2385_v20, %v2384_v15  ;;  %v1326_v32 = vpop.f32.mrb[37].mxu0 }
 0x284   : > { %v4997_v33 = vpack.c.bf16 %v2383_v28, %v2382_v24  ;;  %v3492_v58 = vpop.f32.mrb[38].mxu0 }
 0x285   : > { %v4999_v48 = vpack.c.bf16 %v3492_v58, %v3491_v30  ;;  %v1329_v52 = vpop.f32.mrb[39].mxu0  ;;  %3560 = vmatpush3.bf16.msra.mxu1 %v4851_v1 }
 0x286   : > { %v5002_v4 = vpack.c.bf16 %v1329_v52, %v1326_v32  ;;  %3561 = vmatprep.subr.bf16.mxu1 %v4878_v27 }
 0x287   : > { %v2380_v59 = vunpack.c.l.bf16 %v4999_v48  ;;  %v2381_v0 = vunpack.c.h.bf16 %v4999_v48 }
 0x288   : > { %v2378_v26 = vunpack.c.l.bf16 %v5002_v4  ;;  %v2379_v36 = vunpack.c.h.bf16 %v5002_v4  ;;  %3554 = vmatmul.mubr.msk.bf16.gmra.mrb[12].mxu1 %vm1441_vm1, %v4871_v22 }
 0x289   : > { %v2388_v39 = vsub.f32 %v3491_v30, %v2380_v59  ;;  %v2389_v41 = vsub.f32 %v3492_v58, %v2381_v0  ;;  %3562 = vmatpush3.bf16.msra.mxu1 %v4878_v27  ;;  %3565 = vmatprep.mubr.msk.bf16.mxu1 %vm1441_vm1, %v4876_v25 }
 0x28a   : > { %v2386_v1 = vsub.f32 %v1326_v32, %v2378_v26  ;;  %v2387_v42 = vsub.f32 %v1329_v52, %v2379_v36  ;;  %3563 = vmatprep.subr.bf16.mxu1 %v4873_v23  ;;  %v4265_v32 = vmov 0.0  }
 0x28b   : > { %v5015_v40 = vpack.c.bf16 %v2389_v41, %v2388_v39  ;;  %3745 = vmatprep.subr.bf16.mxu0 %v4265_v32  ;;  %3753 = vmatprep.mubr.msk.bf16.mxu0 %vm4266_vm2, %v4265_v32 }
 0x28c   : > { %v5017_v43 = vpack.c.bf16 %v2387_v42, %v2386_v1 }
 0x28d   : > { %3564 = vmatpush3.bf16.msra.mxu1 %v4873_v23 }
 0x28e   : > { %3573 = vmatprep.subr.bf16.mxu1 %v4869_v19 }
 0x290   : > { %3566 = vmatmul.mubr.msk.bf16.vlgmr.msra.gmra.mrb[8].mxu1 %vm1441_vm1, %v4893_v37 }
 0x291   : > { %3574 = vmatpush3.bf16.msra.mxu1 %v4869_v19  ;;  %3569 = vmatprep.mubr.msk.bf16.mxu1 %vm1441_vm1, %v4898_v8 }
 0x292   : > { %3575 = vmatprep.subr.bf16.mxu1 %v4867_v16 }
 0x295   : > { %3576 = vmatpush3.bf16.msra.mxu1 %v4867_v16 }
 0x296   : > { %3577 = vmatprep.subr.bf16.mxu1 %v4891_v34 }
 0x298   : > { %3570 = vmatmul.mubr.msk.bf16.gmra.mrb[12].mxu1 %vm1441_vm1, %v4917_v51 }
 0x299   : > { %3578 = vmatpush3.bf16.msra.mxu1 %v4891_v34  ;;  %3581 = vmatprep.mubr.msk.bf16.mxu1 %vm1441_vm1, %v4876_v25 }
 0x29a   : > { %3579 = vmatprep.subr.bf16.mxu1 %v4889_v18 }
 0x29d   : > { %3580 = vmatpush3.bf16.msra.mxu1 %v4889_v18 }
 0x29e   : > { %3589 = vmatprep.subr.bf16.mxu1 %v4900_v11 }
 0x2a0   : > { %3582 = vmatmul.mubr.msk.bf16.vlgmr.msra.gmra.mrb[8].mxu1 %vm1441_vm1, %v4893_v37 }
 0x2a1   : > { %3590 = vmatpush3.bf16.msra.mxu1 %v4900_v11  ;;  %3585 = vmatprep.mubr.msk.bf16.mxu1 %vm1441_vm1, %v4898_v8 }
 0x2a2   : > { %3591 = vmatprep.subr.bf16.mxu1 %v4895_v53 }
 0x2a5   : > { %3592 = vmatpush3.bf16.msra.mxu1 %v4895_v53 }
 0x2a6   : > { %3593 = vmatprep.subr.bf16.mxu1 %v4922_v38 }
 0x2a8   : > { %3586 = vmatmul.mubr.msk.bf16.gmra.mrb[12].mxu1 %vm1441_vm1, %v4917_v51 }
 0x2a9   : > { %3594 = vmatpush3.bf16.msra.mxu1 %v4922_v38  ;;  %3597 = vmatprep.mubr.msk.bf16.mxu1 %vm1441_vm1, %v4826_v44 }
 0x2aa   : > { %3595 = vmatprep.subr.bf16.mxu1 %v4919_v54 }
 0x2ad   : > { %3596 = vmatpush3.bf16.msra.mxu1 %v4919_v54 }
 0x2ae   : > { %3605 = vmatprep.subr.bf16.mxu1 %v4900_v11 }
 0x2b0   : > { %3598 = vmatmul.mubr.msk.bf16.vlgmr.msra.gmra.mrb[16].mxu1 %vm1441_vm1, %v4849_v63 }
 0x2b1   : > { %3606 = vmatpush3.bf16.msra.mxu1 %v4900_v11  ;;  %3601 = vmatprep.mubr.msk.bf16.mxu1 %vm1441_vm1, %v4854_v3 }
 0x2b2   : > { %3607 = vmatprep.subr.bf16.mxu1 %v4895_v53 }
 0x2b5   : > { %3608 = vmatpush3.bf16.msra.mxu1 %v4895_v53 }
 0x2b6   : > { %3609 = vmatprep.subr.bf16.mxu1 %v4922_v38 }
 0x2b8   : > { %3602 = vmatmul.mubr.msk.bf16.gmra.mrb[20].mxu1 %vm1441_vm1, %v4871_v22 }
 0x2b9   : > { %3610 = vmatpush3.bf16.msra.mxu1 %v4922_v38  ;;  %3613 = vmatprep.mubr.msk.bf16.mxu1 %vm1441_vm1, %v4876_v25 }
 0x2ba   : > { %3611 = vmatprep.subr.bf16.mxu1 %v4919_v54 }
 0x2bd   : > { %3612 = vmatpush3.bf16.msra.mxu1 %v4919_v54 }
 0x2be   : > { %3621 = vmatprep.subr.bf16.mxu1 %v4915_v49 }
 0x2c0   : > { %3614 = vmatmul.mubr.msk.bf16.vlgmr.msra.gmra.mrb[16].mxu1 %vm1441_vm1, %v4893_v37 }
 0x2c1   : > { %3622 = vmatpush3.bf16.msra.mxu1 %v4915_v49  ;;  %3617 = vmatprep.mubr.msk.bf16.mxu1 %vm1441_vm1, %v4898_v8 }
 0x2c2   : > { %3623 = vmatprep.subr.bf16.mxu1 %v4913_v46 }
 0x2c5   : > { %3624 = vmatpush3.bf16.msra.mxu1 %v4913_v46 }
 0x2c6   : > { %3625 = vmatprep.subr.bf16.mxu1 %v4937_v14 }
 0x2c8   : > { %3618 = vmatmul.mubr.msk.bf16.gmra.mrb[20].mxu1 %vm1441_vm1, %v4917_v51 }
 0x2c9   : > { %3626 = vmatpush3.bf16.msra.mxu1 %v4937_v14  ;;  %3629 = vmatprep.mubr.msk.bf16.mxu1 %vm1441_vm1, %v4876_v25 }
 0x2ca   : > { %3627 = vmatprep.subr.bf16.mxu1 %v4935_v12 }
 0x2cd   : > { %3628 = vmatpush3.bf16.msra.mxu1 %v4935_v12 }
 0x2ce   : > { %3637 = vmatprep.subr.bf16.mxu1 %v4942_v61 }
 0x2d0   : > { %3630 = vmatmul.mubr.msk.bf16.vlgmr.msra.gmra.mrb[16].mxu1 %vm1441_vm1, %v4893_v37 }
 0x2d1   : > { %3638 = vmatpush3.bf16.msra.mxu1 %v4942_v61  ;;  %3633 = vmatprep.mubr.msk.bf16.mxu1 %vm1441_vm1, %v4898_v8 }
 0x2d2   : > { %3639 = vmatprep.subr.bf16.mxu1 %v4939_v17 }
 0x2d5   : > { %3640 = vmatpush3.bf16.msra.mxu1 %v4939_v17 }
 0x2d6   : > { %3641 = vmatprep.subr.bf16.mxu1 %v4962_v29 }
 0x2d8   : > { %3634 = vmatmul.mubr.msk.bf16.gmra.mrb[20].mxu1 %vm1441_vm1, %v4917_v51 }
 0x2d9   : > { %3642 = vmatpush3.bf16.msra.mxu1 %v4962_v29  ;;  %3645 = vmatprep.mubr.msk.bf16.mxu1 %vm1441_vm1, %v4826_v44 }
 0x2da   : > { %3643 = vmatprep.subr.bf16.mxu1 %v4959_v57 }
 0x2dd   : > { %3644 = vmatpush3.bf16.msra.mxu1 %v4959_v57 }
 0x2de   : > { %3653 = vmatprep.subr.bf16.mxu1 %v4942_v61 }
 0x2e0   : > { %3646 = vmatmul.mubr.msk.bf16.vlgmr.msra.gmra.mrb[24].mxu1 %vm1441_vm1, %v4849_v63 }
 0x2e1   : > { %3654 = vmatpush3.bf16.msra.mxu1 %v4942_v61  ;;  %3649 = vmatprep.mubr.msk.bf16.mxu1 %vm1441_vm1, %v4854_v3 }
 0x2e2   : > { %3655 = vmatprep.subr.bf16.mxu1 %v4939_v17 }
 0x2e5   : > { %3656 = vmatpush3.bf16.msra.mxu1 %v4939_v17 }
 0x2e6   : > { %3657 = vmatprep.subr.bf16.mxu1 %v4962_v29 }
 0x2e8   : > { %3650 = vmatmul.mubr.msk.bf16.gmra.mrb[28].mxu1 %vm1441_vm1, %v4871_v22 }
 0x2e9   : > { %3658 = vmatpush3.bf16.msra.mxu1 %v4962_v29  ;;  %3661 = vmatprep.mubr.msk.bf16.mxu1 %vm1441_vm1, %v4876_v25 }
 0x2ea   : > { %3659 = vmatprep.subr.bf16.mxu1 %v4959_v57 }
 0x2ed   : > { %3660 = vmatpush3.bf16.msra.mxu1 %v4959_v57 }
 0x2ee   : > { %3669 = vmatprep.subr.bf16.mxu1 %v4957_v21 }
 0x2f0   : > { %3662 = vmatmul.mubr.msk.bf16.vlgmr.msra.gmra.mrb[24].mxu1 %vm1441_vm1, %v4893_v37 }
 0x2f1   : > { %3670 = vmatpush3.bf16.msra.mxu1 %v4957_v21  ;;  %3665 = vmatprep.mubr.msk.bf16.mxu1 %vm1441_vm1, %v4898_v8 }
 0x2f2   : > { %3671 = vmatprep.subr.bf16.mxu1 %v4955_v55 }
 0x2f5   : > { %3672 = vmatpush3.bf16.msra.mxu1 %v4955_v55 }
 0x2f6   : > { %3673 = vmatprep.subr.bf16.mxu1 %v4977_v62 }
 0x2f8   : > { %3666 = vmatmul.mubr.msk.bf16.gmra.mrb[28].mxu1 %vm1441_vm1, %v4917_v51 }
 0x2f9   : > { %3674 = vmatpush3.bf16.msra.mxu1 %v4977_v62  ;;  %3677 = vmatprep.mubr.msk.bf16.mxu1 %vm1441_vm1, %v4876_v25 }
 0x2fa   : > { %3675 = vmatprep.subr.bf16.mxu1 %v4975_v56 }
 0x2fd   : > { %3676 = vmatpush3.bf16.msra.mxu1 %v4975_v56 }
 0x2fe   : > { %3685 = vmatprep.subr.bf16.mxu1 %v4982_v7 }
 0x300   : > { %3678 = vmatmul.mubr.msk.bf16.vlgmr.msra.gmra.mrb[24].mxu1 %vm1441_vm1, %v4893_v37 }
 0x301   : > { %3686 = vmatpush3.bf16.msra.mxu1 %v4982_v7  ;;  %3681 = vmatprep.mubr.msk.bf16.mxu1 %vm1441_vm1, %v4898_v8 }
 0x302   : > { %3687 = vmatprep.subr.bf16.mxu1 %v4979_v5 }
 0x305   : > { %3688 = vmatpush3.bf16.msra.mxu1 %v4979_v5 }
 0x306   : > { %3689 = vmatprep.subr.bf16.mxu1 %v5002_v4 }
 0x308   : > { %3682 = vmatmul.mubr.msk.bf16.gmra.mrb[28].mxu1 %vm1441_vm1, %v4917_v51 }
 0x309   : > { %3690 = vmatpush3.bf16.msra.mxu1 %v5002_v4  ;;  %3693 = vmatprep.mubr.msk.bf16.mxu1 %vm1441_vm1, %v4826_v44 }
 0x30a   : > { %3691 = vmatprep.subr.bf16.mxu1 %v4999_v48 }
 0x30d   : > { %3692 = vmatpush3.bf16.msra.mxu1 %v4999_v48 }
 0x30e   : > { %3701 = vmatprep.subr.bf16.mxu1 %v4982_v7 }
 0x310   : > { %3694 = vmatmul.mubr.msk.bf16.vlgmr.msra.gmra.mrb[32].mxu1 %vm1441_vm1, %v4849_v63 }
 0x311   : > { %3702 = vmatpush3.bf16.msra.mxu1 %v4982_v7  ;;  %3697 = vmatprep.mubr.msk.bf16.mxu1 %vm1441_vm1, %v4854_v3 }
 0x312   : > { %3703 = vmatprep.subr.bf16.mxu1 %v4979_v5 }
 0x315   : > { %3704 = vmatpush3.bf16.msra.mxu1 %v4979_v5 }
 0x316   : > { %3705 = vmatprep.subr.bf16.mxu1 %v5002_v4 }
 0x318   : > { %3698 = vmatmul.mubr.msk.bf16.gmra.mrb[36].mxu1 %vm1441_vm1, %v4871_v22 }
 0x319   : > { %3706 = vmatpush3.bf16.msra.mxu1 %v5002_v4  ;;  %3709 = vmatprep.mubr.msk.bf16.mxu1 %vm1441_vm1, %v4876_v25 }
 0x31a   : > { %3707 = vmatprep.subr.bf16.mxu1 %v4999_v48 }
 0x31d   : > { %3708 = vmatpush3.bf16.msra.mxu1 %v4999_v48 }
 0x31e   : > { %3717 = vmatprep.subr.bf16.mxu1 %v4997_v33 }
 0x320   : > { %3710 = vmatmul.mubr.msk.bf16.vlgmr.msra.gmra.mrb[32].mxu1 %vm1441_vm1, %v4893_v37 }
 0x321   : > { %3718 = vmatpush3.bf16.msra.mxu1 %v4997_v33  ;;  %3713 = vmatprep.mubr.msk.bf16.mxu1 %vm1441_vm1, %v4898_v8 }
 0x322   : > { %3719 = vmatprep.subr.bf16.mxu1 %v4995_v31 }
 0x325   : > { %3720 = vmatpush3.bf16.msra.mxu1 %v4995_v31 }
 0x326   : > { %3721 = vmatprep.subr.bf16.mxu1 %v5017_v43 }
 0x328   : > { %3714 = vmatmul.mubr.msk.bf16.gmra.mrb[36].mxu1 %vm1441_vm1, %v4917_v51 }
 0x329   : > { %3722 = vmatpush3.bf16.msra.mxu1 %v5017_v43  ;;  %3725 = vmatprep.mubr.msk.bf16.mxu1 %vm1441_vm1, %v4876_v25 }
 0x32a   : > { %3723 = vmatprep.subr.bf16.mxu1 %v5015_v40 }
 0x32d   : > { %3724 = vmatpush3.bf16.msra.mxu1 %v5015_v40 }
 0x32e   : > { %3733 = vmatprep.subr.bf16.mxu1 %v4265_v32 }
 0x330   : > { %3726 = vmatmul.mubr.msk.bf16.vlgmr.msra.gmra.mrb[32].mxu1 %vm1441_vm1, %v4893_v37 }
 0x331   : > { %3729 = vmatprep.mubr.msk.bf16.mxu1 %vm1441_vm1, %v4898_v8 }
 0x338   : > { %3730 = vmatmul.mubr.msk.bf16.gmra.mrb[36].mxu1 %vm1441_vm1, %v4917_v51 }
 0x339   : > { %3741 = vmatprep.mubr.msk.bf16.mxu1 %vm4266_vm2, %v4265_v32 }
 0x343   : > { %v3535_v44 = vpop.f32.mrb[0].mxu1 }
 0x344   : > { %v1650_v63 = vpop.f32.mrb[1].mxu1  ;;  %v5186_v18 = vmul.f32 %v3535_v44, %v3535_v44 }
 0x345   : > { %v3536_v3 = vpop.f32.mrb[2].mxu1  ;;  %v5192_v8 = vmul.f32 %v1650_v63, %v1650_v63 }
 0x346   : > { %v1653_v16 = vpop.f32.mrb[3].mxu1  ;;  %v5198_v51 = vmul.f32 %v3536_v3, %v3536_v3 }
 0x347   : > { %v5206_v17 = vmul.f32 %v1653_v16, %v1653_v16 }
 0x34b   : > { %v3539_v19 = vpop.f32.mrb[4].mxu1 }
 0x34c   : > { %v1666_v22 = vpop.f32.mrb[5].mxu1  ;;  %v5215_v47 = vmul.f32 %v3539_v19, %v3539_v19 }
 0x34d   : > { %v3540_v23 = vpop.f32.mrb[6].mxu1  ;;  %v5221_v62 = vmul.f32 %v1666_v22, %v1666_v22 }
 0x34e   : > { %v1669_v25 = vpop.f32.mrb[7].mxu1  ;;  %v5227_v7 = vmul.f32 %v3540_v23, %v3540_v23 }
 0x34f   : > { %v5237_v15 = vmul.f32 %v1669_v25, %v1669_v25 }
 0x373   : > { %v3583_v27 = vpop.f32.mrb[8].mxu1 }
 0x374   : > { %v5188_v34 = vmul.f32 %v3583_v27, %v3583_v27  ;;  %v5190_v37 = vmul.f32 %v3583_v27, %v3535_v44  ;;  %v1877_v53 = vpop.f32.mrb[9].mxu1 }
 0x375   : > { %v5194_v11 = vmul.f32 %v1877_v53, %v1877_v53  ;;  %v5196_v46 = vmul.f32 %v1877_v53, %v1650_v63  ;;  %v3584_v49 = vpop.f32.mrb[10].mxu1 }
 0x376   : > { %v2687_v54 = vadd.f32 %v5188_v34, %v5186_v18  ;;  %v5202_v38 = vmul.f32 %v3584_v49, %v3584_v49  ;;  %v5204_v12 = vmul.f32 %v3584_v49, %v3536_v3  ;;  %v1880_v14 = vpop.f32.mrb[11].mxu1 }
 0x377   : > { %v2685_v61 = vadd.f32 %v5194_v11, %v5192_v8  ;;  %v2606_v55 = vmul.f32 %v1880_v14, %v1880_v14  ;;  %v5210_v21 = vmul.f32 %v1880_v14, %v1653_v16 }
 0x378   : > { %v2688_v57 = vadd.f32 %v5202_v38, %v5198_v51 }
 0x379   : > { %v2686_v29 = vadd.f32 %v2606_v55, %v5206_v17  ;;  %v2693_v14 = vadd.f32 0.0001, %v2685_v61 }
 0x37b   : > { %v3587_v45 = vpop.f32.mrb[12].mxu1 }
 0x37c   : > { %v5217_v50 = vmul.f32 %v3587_v45, %v3587_v45  ;;  %v5219_v56 = vmul.f32 %v3587_v45, %v3539_v19  ;;  %v1893_v60 = vpop.f32.mrb[13].mxu1 }
 0x37d   : > { %v5223_v2 = vmul.f32 %v1893_v60, %v1893_v60  ;;  %v5225_v5 = vmul.f32 %v1893_v60, %v1666_v22  ;;  %v3588_v6 = vpop.f32.mrb[14].mxu1 }
 0x37e   : > { %v5231_v35 = vadd.f32 %v5217_v50, %v5215_v47  ;;  %v5233_v9 = vmul.f32 %v3588_v6, %v3588_v6  ;;  %v5235_v10 = vmul.f32 %v3588_v6, %v3540_v23  ;;  %v1896_v13 = vpop.f32.mrb[15].mxu1 }
 0x37f   : > { %v5241_v20 = vadd.f32 %v5223_v2, %v5221_v62  ;;  %v5243_v24 = vmul.f32 %v1896_v13, %v1896_v13  ;;  %v5245_v28 = vmul.f32 %v1896_v13, %v1669_v25 }
 0x380   : > { %v5249_v30 = vadd.f32 %v5233_v9, %v5227_v7 }
 0x381   : > { %v5253_v31 = vadd.f32 %v5243_v24, %v5237_v15 }
 0x3a3   : > { %v3631_v33 = vpop.f32.mrb[16].mxu1 }
 0x3a4   : > { %v2623_v58 = vsub.f32 %v3631_v33, %v5186_v18  ;;  %v2104_v48 = vpop.f32.mrb[17].mxu1 }
 0x3a5   : > { %v2621_v52 = vsub.f32 %v2104_v48, %v5192_v8  ;;  %v3632_v4 = vpop.f32.mrb[18].mxu1  ;;  %v2695_v8 = vadd.f32 0.0001, %v2687_v54 }
 0x3a6   : > { %v2624_v59 = vsub.f32 %v3632_v4, %v5198_v51  ;;  %v2107_v0 = vpop.f32.mrb[19].mxu1 }
 0x3a7   : > { %v2622_v26 = vsub.f32 %v2107_v0, %v5206_v17  ;;  %v2697_v0 = vadd.f32 0.0001, %v5241_v20 }
 0x3ab   : > { %v3635_v36 = vpop.f32.mrb[20].mxu1 }
 0x3ac   : > { %v2627_v39 = vsub.f32 %v3635_v36, %v5215_v47  ;;  %v2120_v41 = vpop.f32.mrb[21].mxu1  ;;  %v2696_v47 = vadd.f32 0.0001, %v2688_v57  ;;  %v2700_v36 = vadd.f32 0.0001, %v5249_v30  ;;  %v2645_v30 = vmul.f32 2.0, %v5196_v46 }
 0x3ad   : > { %v2625_v1 = vsub.f32 %v2120_v41, %v5221_v62  ;;  %v3636_v42 = vpop.f32.mrb[22].mxu1 }
 0x3ae   : > { %v2628_v40 = vsub.f32 %v3636_v42, %v5227_v7  ;;  %v2123_v43 = vpop.f32.mrb[23].mxu1 }
 0x3af   : > { %v2626_v44 = vsub.f32 %v2123_v43, %v5237_v15 }
 0x3d3   : > { %v3679_v63 = vpop.f32.mrb[24].mxu1 }
 0x3d4   : > { %v2631_v3 = vsub.f32 %v3679_v63, %v5188_v34  ;;  %v2331_v16 = vpop.f32.mrb[25].mxu1  ;;  %v2694_v34 = vadd.f32 0.0001, %v2686_v29  ;;  %v2699_v29 = vadd.f32 0.0001, %v5231_v35 }
 0x3d5   : > { %v2629_v19 = vsub.f32 %v2331_v16, %v5194_v11  ;;  %v3680_v22 = vpop.f32.mrb[26].mxu1  ;;  %v2649_v16 = vmul.f32 2.0, %v5225_v5 }
 0x3d6   : > { %v2703_v23 = vadd.f32 %v2631_v3, %v2623_v58  ;;  %v2632_v25 = vsub.f32 %v3680_v22, %v5202_v38  ;;  %v2334_v27 = vpop.f32.mrb[27].mxu1  ;;  %v2651_v3 = vmul.f32 2.0, %v5219_v56  ;;  %v2652_v22 = vmul.f32 2.0, %v5235_v10 }
 0x3d7   : > { %v2701_v18 = vadd.f32 %v2629_v19, %v2621_v52  ;;  %v2630_v53 = vsub.f32 %v2334_v27, %v2606_v55 }
 0x3d8   : > { %v2711_v49 = vadd.f32 0.0009, %v2703_v23  ;;  %v2704_v51 = vadd.f32 %v2632_v25, %v2624_v59  ;;  %v2650_v23 = vmul.f32 2.0, %v5245_v28 }
 0x3d9   : > { %v2709_v17 = vadd.f32 0.0009, %v2701_v18  ;;  %v2702_v45 = vadd.f32 %v2630_v53, %v2622_v26  ;;  %v2653_v18 = vadd.f32 0.0001, %v2645_v30 }
 0x3da   : > { %v2719_v60 = vmul.f32 %v2711_v49, %v2695_v8  ;;  %v2712_v62 = vadd.f32 0.0009, %v2704_v51 }
 0x3db   : > { %v2717_v6 = vmul.f32 %v2709_v17, %v2693_v14  ;;  %v2710_v7 = vadd.f32 0.0009, %v2702_v45  ;;  %v3683_v11 = vpop.f32.mrb[28].mxu1 }
 0x3dc   : > { %v2720_v13 = vmul.f32 %v2712_v62, %v2696_v47  ;;  %v2635_v15 = vsub.f32 %v3683_v11, %v5217_v50  ;;  %v2347_v38 = vpop.f32.mrb[29].mxu1  ;;  %4016 = vrcp.f32 %v2719_v60  ;;  %v5286_v47 = vadd.f32 0.0001, %v2651_v3 }
 0x3dd   : > { %v2718_v33 = vmul.f32 %v2710_v7, %v2694_v34  ;;  %v2633_v55 = vsub.f32 %v2347_v38, %v5223_v2  ;;  %v3684_v54 = vpop.f32.mrb[30].mxu1  ;;  %4018 = vrcp.f32 %v2717_v6  ;;  %v5288_v62 = vadd.f32 0.0001, %v2649_v16 }
 0x3de   : > { %v2707_v58 = vadd.f32 %v2635_v15, %v2627_v39  ;;  %v2636_v61 = vsub.f32 %v3684_v54, %v5233_v9  ;;  %v2350_v48 = vpop.f32.mrb[31].mxu1  ;;  %v2698_v39 = vadd.f32 0.0001, %v5253_v31  ;;  %4020 = vrcp.f32 %v2720_v13 }
 0x3df   : > { %v2705_v52 = vadd.f32 %v2633_v55, %v2625_v1  ;;  %v2634_v57 = vsub.f32 %v2350_v48, %v5243_v24  ;;  %4022 = vrcp.f32 %v2718_v33  ;;  %v2647_v24 = vmul.f32 2.0, %v5190_v37 }
 0x3e0   : > { %v2715_v4 = vadd.f32 0.0009, %v2707_v58  ;;  %v2708_v59 = vadd.f32 %v2636_v61, %v2628_v40  ;;  %v2648_v31 = vmul.f32 2.0, %v5204_v12  ;;  %v5291_v15 = vadd.f32 0.0001, %v2652_v22 }
 0x3e1   : > { %v2713_v26 = vadd.f32 0.0009, %v2705_v52  ;;  %v2706_v50 = vadd.f32 %v2634_v57, %v2626_v44  ;;  %v2646_v44 = vmul.f32 2.0, %v5210_v21  ;;  %v2655_v27 = vadd.f32 0.0001, %v2647_v24 }
 0x3e2   : > { %v2723_v41 = vmul.f32 %v2715_v4, %v2699_v29  ;;  %v2716_v2 = vadd.f32 0.0009, %v2708_v59  ;;  %v2656_v49 = vadd.f32 0.0001, %v2648_v31 }
 0x3e3   : > { %v2721_v42 = vmul.f32 %v2713_v26, %v2697_v0  ;;  %v2714_v9 = vadd.f32 0.0009, %v2706_v50  ;;  %v2654_v51 = vadd.f32 0.0001, %v2646_v44 }
 0x3e4   : > { %v2724_v43 = vmul.f32 %v2716_v2, %v2700_v36  ;;  %4024 = vrcp.f32 %v2723_v41 }
 0x3e5   : > { %v2722_v1 = vmul.f32 %v2714_v9, %v2698_v39  ;;  %4026 = vrcp.f32 %v2721_v42 }
 0x3e6   : > { %4028 = vrcp.f32 %v2724_v43  ;;  %v4017_v35 = vpop.eup %4016 }
 0x3e7   : > { %4030 = vrcp.f32 %v2722_v1  ;;  %v4019_v20 = vpop.eup %4018  ;;  %v2735_v19 = vmul.f32 %v4017_v35, %v2719_v60 }
 0x3e8   : > { %v4021_v40 = vpop.eup %4020  ;;  %v2733_v25 = vmul.f32 %v4019_v20, %v2717_v6  ;;  %v5293_v6 = vadd.f32 0.0001, %v2650_v23 }
 0x3e9   : > { %v4023_v63 = vpop.eup %4022  ;;  %v2736_v53 = vmul.f32 %v4021_v40, %v2720_v13  ;;  %v2743_v34 = vsub.f32 2.0, %v2735_v19 }
 0x3ea   : > { %v2734_v14 = vmul.f32 %v4023_v63, %v2718_v33  ;;  %v2741_v13 = vsub.f32 2.0, %v2733_v25 }
 0x3eb   : > { %v2744_v54 = vsub.f32 2.0, %v2736_v53  ;;  %v2751_v26 = vmul.f32 %v4017_v35, %v2743_v34 }
 0x3ec   : > { %v2742_v57 = vsub.f32 2.0, %v2734_v14 }
 0x3ed   : > { %v2752_v30 = vmul.f32 %v4021_v40, %v2744_v54 }
 0x3ee   : > { %v4025_v8 = vpop.eup %4024  ;;  %v2750_v3 = vmul.f32 %v4023_v63, %v2742_v57 }
 0x3ef   : > { %v4027_v45 = vpop.eup %4026  ;;  %v2739_v58 = vmul.f32 %v4025_v8, %v2723_v41 }
 0x3f0   : > { %v4029_v11 = vpop.eup %4028  ;;  %v2737_v29 = vmul.f32 %v4027_v45, %v2721_v42 }
 0x3f1   : > { %v4031_v33 = vpop.eup %4030  ;;  %v2740_v59 = vmul.f32 %v4029_v11, %v2724_v43  ;;  %v2747_v9 = vsub.f32 2.0, %v2739_v58 }
 0x3f2   : > { %v2738_v36 = vmul.f32 %v4031_v33, %v2722_v1  ;;  %v2745_v31 = vsub.f32 2.0, %v2737_v29 }
 0x3f3   : > { %v2748_v16 = vsub.f32 2.0, %v2740_v59  ;;  %v2755_v40 = vmul.f32 %v4025_v8, %v2747_v9 }
 0x3f4   : > { %v2746_v22 = vsub.f32 2.0, %v2738_v36  ;;  %v2753_v34 = vmul.f32 %v4027_v45, %v2745_v31 }
 0x403   : > { %v3727_v17 = vpop.f32.mrb[32].mxu1 }
 0x404   : > { %v2639_v60 = vsub.f32 %v3727_v17, %v5190_v37  ;;  %v2558_v7 = vpop.f32.mrb[33].mxu1 }
 0x405   : > { %v2637_v38 = vsub.f32 %v2558_v7, %v5196_v46  ;;  %v3728_v55 = vpop.f32.mrb[34].mxu1  ;;  %v2749_v46 = vmul.f32 %v4019_v20, %v2741_v13  ;;  %v2756_v13 = vmul.f32 %v4029_v11, %v2748_v16 }
 0x406   : > { %v2663_v61 = vmul.f32 2.0, %v2639_v60  ;;  %v2640_v48 = vsub.f32 %v3728_v55, %v5204_v12  ;;  %v2561_v52 = vpop.f32.mrb[35].mxu1 }
 0x407   : > { %v2661_v37 = vmul.f32 2.0, %v2637_v38  ;;  %v2638_v4 = vsub.f32 %v2561_v52, %v5210_v21 }
 0x408   : > { %v2671_v0 = vadd.f32 0.0009, %v2663_v61  ;;  %v2664_v50 = vmul.f32 2.0, %v2640_v48 }
 0x409   : > { %v2669_v2 = vadd.f32 0.0009, %v2661_v37  ;;  %v2662_v39 = vmul.f32 2.0, %v2638_v4 }
 0x40a   : > { %v2679_v24 = vmul.f32 %v2671_v0, %v2655_v27  ;;  %v2672_v41 = vadd.f32 0.0009, %v2664_v50 }
 0x40b   : > { %v2677_v12 = vmul.f32 %v2669_v2, %v2653_v18  ;;  %v2670_v44 = vadd.f32 0.0009, %v2662_v39  ;;  %v3731_v42 = vpop.f32.mrb[36].mxu1 }
 0x40c   : > { %v2759_v19 = vmul.f32 %v2751_v26, %v2679_v24  ;;  %v2680_v21 = vmul.f32 %v2672_v41, %v2656_v49  ;;  %v2643_v43 = vsub.f32 %v3731_v42, %v5219_v56  ;;  %v2574_v35 = vpop.f32.mrb[37].mxu1 }
 0x40d   : > { %v2757_v1 = vmul.f32 %v2749_v46, %v2677_v12  ;;  %v2678_v23 = vmul.f32 %v2670_v44, %v2654_v51  ;;  %v2641_v20 = vsub.f32 %v2574_v35, %v5225_v5  ;;  %v3732_v25 = vpop.f32.mrb[38].mxu1  ;;  %v2754_v5 = vmul.f32 %v4031_v33, %v2746_v22  ;;  %v2789_v12 = vld [vmem:[%s5372_s6] sm:$0x3] }
 0x40e   : > { %v2760_v27 = vmul.f32 %v2752_v30, %v2680_v21  ;;  %v2667_v53 = vmul.f32 2.0, %v2643_v43  ;;  %v2644_v18 = vsub.f32 %v3732_v25, %v5235_v10  ;;  %v2577_v14 = vpop.f32.mrb[39].mxu1 }
 0x40f   : > { %v2758_v63 = vmul.f32 %v2750_v3, %v2678_v23  ;;  %v2665_v17 = vmul.f32 2.0, %v2641_v20  ;;  %v2642_v49 = vsub.f32 %v2577_v14, %v5245_v28 }
 0x410   : > { %v2766_v60 = vpack.c.bf16 %v2760_v27, %v2759_v19  ;;  %v2675_v56 = vadd.f32 0.0009, %v2667_v53  ;;  %v2668_v7 = vmul.f32 2.0, %v2644_v18 }
 0x411   : > { %v2765_v38 = vpack.c.bf16 %v2758_v63, %v2757_v1  ;;  %v2673_v51 = vadd.f32 0.0009, %v2665_v17  ;;  %v2666_v55 = vmul.f32 2.0, %v2642_v49 }
 0x412   : > { %v2772_v54 = vunpack.c.h.bf16 %v2766_v60  ;;  %v2683_v58 = vmul.f32 %v2675_v56, %v5286_v47  ;;  %v2676_v8 = vadd.f32 0.0009, %v2668_v7  ;;  %v2771_v61 = vunpack.c.l.bf16 %v2766_v60 }
 0x413   : > { %v2770_v10 = vunpack.c.h.bf16 %v2765_v38  ;;  %v2681_v48 = vmul.f32 %v2673_v51, %v5288_v62  ;;  %v2674_v52 = vadd.f32 0.0009, %v2666_v55  ;;  %3746 = vmatpush3.bf16.msra.mxu0 %v2765_v38  ;;  %v2769_v45 = vunpack.c.l.bf16 %v2765_v38 }
 0x414   : > { %v2780_v28 = vsub.f32 %v2760_v27, %v2772_v54  ;;  %v2763_v57 = vmul.f32 %v2755_v40, %v2683_v58  ;;  %v2684_v29 = vmul.f32 %v2676_v8, %v5291_v15  ;;  %3747 = vmatprep.subr.bf16.mxu0 %v4265_v32  ;;  %v2779_v11 = vsub.f32 %v2759_v19, %v2771_v61 }
 0x415   : > { %v2778_v37 = vsub.f32 %v2758_v63, %v2770_v10  ;;  %v2761_v33 = vmul.f32 %v2753_v34, %v2681_v48  ;;  %v2682_v4 = vmul.f32 %v2674_v52, %v5293_v6  ;;  %v2777_v47 = vsub.f32 %v2757_v1, %v2769_v45 }
 0x416   : > { %v2764_v59 = vmul.f32 %v2756_v13, %v2684_v29  ;;  %v2786_v0 = vpack.c.bf16 %v2780_v28, %v2779_v11 }
 0x417   : > { %v2762_v26 = vmul.f32 %v2754_v5, %v2682_v4  ;;  %3748 = vmatpush3.bf16.msra.mxu0 %v2766_v60  ;;  %v2785_v62 = vpack.c.bf16 %v2778_v37, %v2777_v47 }
 0x418   : > { %v2768_v50 = vpack.c.bf16 %v2764_v59, %v2763_v57  ;;  %3749 = vmatprep.subr.bf16.mxu0 %v4265_v32 }
 0x419   : > { %v2767_v36 = vpack.c.bf16 %v2762_v26, %v2761_v33  ;;  %3734 = vmatpush3.bf16.msra.mxu1 %v2785_v62 }
 0x41a   : > { %v2776_v2 = vunpack.c.h.bf16 %v2768_v50  ;;  %3735 = vmatprep.subr.bf16.mxu1 %v4265_v32  ;;  %v2775_v15 = vunpack.c.l.bf16 %v2768_v50 }
 0x41b   : > { %v2774_v46 = vunpack.c.h.bf16 %v2767_v36  ;;  %3750 = vmatpush3.bf16.msra.mxu0 %v2767_v36  ;;  %v2773_v39 = vunpack.c.l.bf16 %v2767_v36 }
 0x41c   : > { %v2784_v9 = vsub.f32 %v2764_v59, %v2776_v2  ;;  %3751 = vmatprep.subr.bf16.mxu0 %v4265_v32  ;;  %v2783_v6 = vsub.f32 %v2763_v57, %v2775_v15 }
 0x41d   : > { %v2782_v24 = vsub.f32 %v2762_v26, %v2774_v46  ;;  %3736 = vmatpush3.bf16.msra.mxu1 %v2786_v0  ;;  %v2781_v41 = vsub.f32 %v2761_v33, %v2773_v39 }
 0x41e   : > { %3737 = vmatprep.subr.bf16.mxu1 %v4265_v32  ;;  %v2788_v30 = vpack.c.bf16 %v2784_v9, %v2783_v6 }
 0x41f   : > { %3752 = vmatpush3.bf16.msra.mxu0 %v2768_v50  ;;  %v2787_v31 = vpack.c.bf16 %v2782_v24, %v2781_v41 }
 0x421   : > { %3738 = vmatpush3.bf16.msra.mxu1 %v2787_v31 }
 0x422   : > { %3739 = vmatprep.subr.bf16.mxu1 %v4265_v32  ;;  %3754 = vmatmul.mubr.msk.bf16.vlgmr.msra.gmra.mrb[40].mxu0 %vm1441_vm1, %v2789_v12 }
 0x425   : > { %3740 = vmatpush3.bf16.msra.mxu1 %v2788_v30 }
 0x428   : > { %3742 = vmatmul.mubr.msk.bf16.vlgmr.msra.gmra.mrb[40].mxu1 %vm1441_vm1, %v2789_v12 }
 0x4f5   : > { %v2867_v44 = vpop.f32.mrb[40].mxu0 }
 0x4f6   : > { %v3755_v3 = vpop.f32.mrb[41].mxu0 }
 0x4f7   : > { %v2870_v42 = vpop.f32.mrb[42].mxu0 }
 0x4f8   : > { %v3756_v16 = vpop.f32.mrb[43].mxu0 }
 0x4fb   : > { %v2827_v19 = vpop.f32.mrb[40].mxu1 }
 0x4fc   : > { %v2868_v21 = vadd.f32 %v2867_v44, %v2827_v19  ;;  %v3743_v43 = vpop.f32.mrb[41].mxu1 }
 0x4fd   : > { %v2830_v35 = vpop.f32.mrb[42].mxu1 }
 0x4fe   : > { %v3744_v22 = vpop.f32.mrb[43].mxu1  ;;  %v2874_v32 = vsel %vm2873_vm3, %v2868_v21, 0.0 }
 0x4ff   : > { %2875 = vadd.xlane.f32.xlu0 %v2874_v32 }
 0x58c   : > { %v2876_v1 = vpop.xlane.xlu0 %2875 }
 0x58d   : > { %2877 = vst [vmem:[%s381_s14] sm:$0xf] %v2876_v1 }
 0x58e   : > { %4189 = shalt.err (!%p4186_p3)
}
 0x58f   : > { %s4190_s4 = scalar_lea.hbm %s5324_s17, 64  ;;  %s4194_s30 = scalar_lea.hbm %s5373_s7, 128 }
 0x590   : > { %p4191_p9 = scmp.ne.s32.totalorder %s5324_s17, %s4190_s4  ;;  %p4195_p7 = scmp.lt.u32.totalorder %s5324_s17, %s5373_s7 }
 0x591   : > { %p4196_p12 = scmp.lt.u32.totalorder %s4194_s30, %s4190_s4  ;;  %p4198_p2 = scmp.lt.u32.totalorder %s4190_s4, %s5324_s17 }
 0x592   : > { %p4192_p13 = pnand %p4191_p9, %p4462_p5 }
 0x593   : > { %p4197_p1 = por %p4196_p12, %p4195_p7 }
 0x594   : > { %p4193_p11 = pneg %p4192_p13 }
 0x595   : > { %p4199_p4 = por %p4198_p2, %p4197_p1 }
 0x597   : > { %p4200_p0 = pnand %p4199_p4, %p4193_p11 }
 0x599   : > { %4203 = shalt.err (!%p4200_p0)
}
 0x59a   : > { %3934 = dma.vmem_to_hbm [thread:$0]  (%p4462_p5), %s5319_s29, 64, %s5324_s17, %s2879_s23  }
 0x59b PF: > { %s5399_s22 = sld [smem:[#allocation18_spill]]  ;;  %s2904_s15 = sand.u32 1, %s4242_s24  }
 0x59c   : > { %p5401_p6 = scmp.ge.s32.totalorder %s4254_s27, 2  ;;  %s2905_s14 = scalar_lea.sflag [#allocation5], %s2904_s15 }
 0x5a1   : > { %p5400_p8 = scmp.ne.s32.totalorder %s5399_s22, 0 }
 0x5a3   : > { %p3954_p10 = pnand %p5401_p6, %p5400_p8 }
 0x5a5   : > { %4237 = dma.done.wait (!%p3954_p10), %s2905_s14, 64  }
 0x5a6   : > { %4239 = vsyncadd (!%p3954_p10), %s2905_s14, 4294967232  ;;  %p24_p3 = scmp.ge.s32.totalorder %s4448_s12, 4   ;;  %s5402_s24 = smov %s4246_s25 }
 0x5a7   : > { %s5403_s25 = smov %s4250_s26  ;;  %s5404_s26 = smov %s4458_s18 }
 0x5a8   : > { %s5405_s27 = smov %s4448_s12  ;;  %26 = sbr.rel (!%p24_p3) target bundleno = 12 (0xc), region = 118 }
 0x5af   :  { %2910 = vsyncpa [#allocation4], 1 }
 0x5b0   :  { %2912 = vsyncpa [#allocation4 + $0x1], 1 }
 0x5b1   :  { %2913 = vsyncpa [#allocation7], 1 }
 0x5b2   :  { %2915 = vsyncpa [#allocation7 + $0x1], 1 }
 0x5b3   :  { %2916 = vsyncpa [#allocation10], 1 }
 0x5b4   :  { %2917 = vsyncpa [#allocation5], 1 }
 0x5b5   :  { %2919 = vsyncpa [#allocation5 + $0x1], 1 }

</bundles_post_ra>
